<compile_context>
chip_gen: v6e
topology: v6e:2x2x1
jax: 0.10.0
libtpu: 0.0.40
codegen_flags: <defaults>
</compile_context>

<pallas_src>
import functools
import math

import jax
import jax.numpy as jnp
from jax import lax
from jax.experimental import pallas as pl
from jax.experimental.pallas import tpu as pltpu

EPS = 1e-5
NUM_GROUPS = 32


# ---------------------------------------------------------------------------
# Pass 1: fused QKV projection.  Input block is (1, C, tp) straight from the
# NCHW tensor; one in-register transpose puts it in token-major (tp, C) form.
# The attention scale 1/sqrt(C) is folded into Q here so the O(HW^2) score
# blocks are never scaled elementwise.
# ---------------------------------------------------------------------------
def qkv_projection_kernel(x_ref, wq_ref, wk_ref, wv_ref, bq_ref, bk_ref, bv_ref,
                          q_ref, k_ref, v_ref, *, scale):
    x_t = x_ref[0].T.astype(q_ref.dtype)                        # (tp, C), XLU transpose + cast
    q = jnp.dot(x_t, wq_ref[...], preferred_element_type=jnp.float32) + bq_ref[...]
    k = jnp.dot(x_t, wk_ref[...], preferred_element_type=jnp.float32) + bk_ref[...]
    v = jnp.dot(x_t, wv_ref[...], preferred_element_type=jnp.float32) + bv_ref[...]
    q_ref[0] = (q * scale).astype(q_ref.dtype)
    k_ref[0] = k.astype(k_ref.dtype)
    v_ref[0] = v.astype(v_ref.dtype)


# ---------------------------------------------------------------------------
# Pass 2: flash attention (online softmax over KV tiles) + output projection
# + partial GroupNorm statistics.  Grid = (batch, q-tile, kv-tile[innermost]).
# ---------------------------------------------------------------------------
def flash_attention_kernel(q_ref, k_ref, v_ref, wo_ref, bo_ref, gind_ref,
                           y_ref, s1_ref, s2_ref,
                           m_sc, l_sc, acc_sc, *, cdt):
    ki = pl.program_id(2)

    @pl.when(ki == 0)
    def _():
        m_sc[...] = jnp.full_like(m_sc, -jnp.inf)
        l_sc[...] = jnp.zeros_like(l_sc)
        acc_sc[...] = jnp.zeros_like(acc_sc)

    q = q_ref[0]                                                # (tq, C)
    k = k_ref[0]                                                # (tk, C)
    v = v_ref[0]                                                # (tk, C)

    # scores = q @ k^T: contract the last dim of both operands so no transposed
    # copy of K is materialized (the MXU consumes K directly).
    s = lax.dot_general(q, k, (((1,), (1,)), ((), ())),
                        preferred_element_type=jnp.float32)     # (tq, tk) f32

    m_prev = m_sc[...]
    m_new = jnp.maximum(m_prev, jnp.max(s, axis=-1, keepdims=True))
    alpha = jnp.exp(m_prev - m_new)
    p = jnp.exp(s - m_new)                                      # unnormalized probs (f32)
    l_sc[...] = alpha * l_sc[...] + jnp.sum(p, axis=-1, keepdims=True)
    acc_sc[...] = alpha * acc_sc[...] + jnp.dot(
        p.astype(cdt), v, preferred_element_type=jnp.float32)
    m_sc[...] = m_new

    @pl.when(ki == pl.num_programs(2) - 1)
    def _():
        # Fold the softmax denominator in once per row (exact reciprocal, O(tq*C)).
        attn = acc_sc[...] * (1.0 / l_sc[...])                  # (tq, C) f32
        y = jnp.dot(attn.astype(cdt), wo_ref[...],
                    preferred_element_type=jnp.float32) + bo_ref[...]
        y_ref[0] = y.astype(y_ref.dtype)

        # Partial GroupNorm stats for this query tile (kept in f32): reduce over
        # the tq rows, then fold channels into groups with the (C, G) indicator.
        col_s1 = jnp.sum(y, axis=0, keepdims=True)              # (1, C)
        col_s2 = jnp.sum(y * y, axis=0, keepdims=True)          # (1, C)
        s1_ref[0, 0] = jnp.dot(col_s1, gind_ref[...], preferred_element_type=jnp.float32)
        s2_ref[0, 0] = jnp.dot(col_s2, gind_ref[...], preferred_element_type=jnp.float32)


# ---------------------------------------------------------------------------
# Pass 3: apply GroupNorm (precomputed per-channel scale/shift), transpose the
# tile back to channel-major in-register, add the NCHW residual, write NCHW.
# ---------------------------------------------------------------------------
def groupnorm_residual_kernel(y_ref, x_ref, scale_ref, shift_ref, o_ref):
    yn = y_ref[0].astype(jnp.float32) * scale_ref[0] + shift_ref[0]   # (tp, C)
    o_ref[0] = (yn.T + x_ref[0]).astype(o_ref.dtype)                  # (C, tp) + residual


def _pick_tile(total, preferred):
    for t in preferred:
        if t <= total and total % t == 0:
            return t
    return total


def _vmem_limit_bytes():
    # Default scoped VMEM (16 MiB v5e / 32 MiB v6e,v7x) is far below physical
    # (128 MiB v5e/v6e, 64 MiB per-core v7x); raise it explicitly, with headroom.
    try:
        phys = int(pltpu.get_tpu_info().vmem_capacity_bytes)
    except Exception:
        phys = 64 * 1024 * 1024
    return max(32 * 1024 * 1024, min(phys, 128 * 1024 * 1024) - 8 * 1024 * 1024)


def vae_attention_block(x, params, *, compute_dtype=jnp.bfloat16,
                        tq=None, tk=None, tp=None):
    """x: (N, C, H, W) float32; params: PyTorch-layout weights (see __main__)."""
    n, c, h, w = x.shape
    hw = h * w
    G = NUM_GROUPS
    assert c % G == 0, "GroupNorm(32, C) requires C % 32 == 0"
    cs = c // G
    cdt = compute_dtype

    # Token-major tiles (multiples of 8 rows); tp also serves as the lane dim of the
    # NCHW-layout blocks in passes 1/3, so it must be a multiple of 128 (or == HW).
    tq = tq or _pick_tile(hw, (1024, 512, 256, 128, 64, 32, 16, 8))
    tk = tk or _pick_tile(hw, (512, 256, 128, 64, 32, 16, 8))
    tp = tp or _pick_tile(hw, (512, 256, 128))
    assert hw % tq == 0 and hw % tk == 0 and hw % tp == 0
    assert tp % 128 == 0 or tp == hw, "NCHW-layout tile needs tp % 128 == 0 (or tp == H*W)"
    n_q, n_k, n_p = hw // tq, hw // tk, hw // tp
    vlim = _vmem_limit_bytes()

    # ---- activations stay in NCHW layout; relayout happens in-kernel ----
    x_nchw = x.reshape(n, c, hw).astype(jnp.float32)     # free reshape (also the residual)

    # ---- weights (PyTorch Linear layout -> y = x @ W^T + b); MXU operands in cdt ----
    w_in = params["w_in"].astype(jnp.float32)    # (3C, C)
    b_in = params["b_in"].astype(jnp.float32)    # (3C,)
    wq_t = w_in[0 * c:1 * c].T.astype(cdt)
    wk_t = w_in[1 * c:2 * c].T.astype(cdt)
    wv_t = w_in[2 * c:3 * c].T.astype(cdt)
    bq = b_in[0 * c:1 * c].reshape(1, c)
    bk = b_in[1 * c:2 * c].reshape(1, c)
    bv = b_in[2 * c:3 * c].reshape(1, c)
    wo_t = params["w_out"].astype(jnp.float32).T.astype(cdt)
    bo = params["b_out"].astype(jnp.float32).reshape(1, c)
    gamma = params["gamma"].astype(jnp.float32).reshape(1, c)
    beta = params["beta"].astype(jnp.float32).reshape(1, c)
    # (C, G) channel->group indicator used for the per-group sums inside pass 2.
    gind = (jnp.arange(c)[:, None] // cs == jnp.arange(G)[None, :]).astype(jnp.float32)

    wfull2 = lambda b, i: (0, 0)
    wfull3 = lambda b, qi, ki: (0, 0)

    # ---- Pass 1: QKV projection (NCHW in, token-major Q/K/V out) ----
    q, k, v = pl.pallas_call(
        functools.partial(qkv_projection_kernel, scale=1.0 / math.sqrt(c)),
        out_shape=[jax.ShapeDtypeStruct((n, hw, c), cdt)] * 3,
        grid_spec=pltpu.PrefetchScalarGridSpec(
            num_scalar_prefetch=0,
            grid=(n, n_p),
            in_specs=[
                pl.BlockSpec((1, c, tp), lambda b, i: (b, 0, i)),
                # Constant-index weight blocks are DMA'd once (index never changes).
                pl.BlockSpec((c, c), wfull2), pl.BlockSpec((c, c), wfull2),
                pl.BlockSpec((c, c), wfull2),
                pl.BlockSpec((1, c), wfull2), pl.BlockSpec((1, c), wfull2),
                pl.BlockSpec((1, c), wfull2),
            ],
            out_specs=[pl.BlockSpec((1, tp, c), lambda b, i: (b, i, 0))] * 3,
        ),
        compiler_params=pltpu.CompilerParams(
            dimension_semantics=("parallel", "parallel"),
            vmem_limit_bytes=vlim),
    )(x_nchw, wq_t, wk_t, wv_t, bq, bk, bv)

    # ---- Pass 2: flash attention + out-projection + partial GroupNorm stats ----
    y, s1p, s2p = pl.pallas_call(
        functools.partial(flash_attention_kernel, cdt=cdt),
        out_shape=[
            jax.ShapeDtypeStruct((n, hw, c), cdt),
            jax.ShapeDtypeStruct((n, n_q, 1, G), jnp.float32),
            jax.ShapeDtypeStruct((n, n_q, 1, G), jnp.float32),
        ],
        grid_spec=pltpu.PrefetchScalarGridSpec(
            num_scalar_prefetch=0,
            grid=(n, n_q, n_k),
            in_specs=[
                pl.BlockSpec((1, tq, c), lambda b, qi, ki: (b, qi, 0)),   # Q
                pl.BlockSpec((1, tk, c), lambda b, qi, ki: (b, ki, 0)),   # K
                pl.BlockSpec((1, tk, c), lambda b, qi, ki: (b, ki, 0)),   # V
                pl.BlockSpec((c, c), wfull3),                             # Wo
                pl.BlockSpec((1, c), wfull3),                             # bo
                pl.BlockSpec((c, G), wfull3),                             # group indicator
            ],
            out_specs=[
                pl.BlockSpec((1, tq, c), lambda b, qi, ki: (b, qi, 0)),
                pl.BlockSpec((1, 1, 1, G), lambda b, qi, ki: (b, qi, 0, 0)),
                pl.BlockSpec((1, 1, 1, G), lambda b, qi, ki: (b, qi, 0, 0)),
            ],
            scratch_shapes=[
                pltpu.VMEM((tq, 1), jnp.float32),   # running max m
                pltpu.VMEM((tq, 1), jnp.float32),   # running denom l
                pltpu.VMEM((tq, c), jnp.float32),   # output accumulator
            ],
        ),
        compiler_params=pltpu.CompilerParams(
            dimension_semantics=("parallel", "parallel", "arbitrary"),
            vmem_limit_bytes=vlim),
    )(q, k, v, wo_t, bo, gind)

    # ---- GroupNorm finalize: N*G scalars -> per-channel scale/shift (JAX glue) ----
    count = jnp.float32(hw * cs)
    s1 = jnp.sum(s1p[:, :, 0, :], axis=1)                       # (N, G)
    s2 = jnp.sum(s2p[:, :, 0, :], axis=1)                       # (N, G)
    mean_g = s1 / count
    var_g = s2 / count - mean_g * mean_g                        # biased var (PyTorch GN)
    rstd_g = 1.0 / jnp.sqrt(var_g + EPS)
    mean_c = jnp.repeat(mean_g, cs, axis=1)                     # (N, C)
    rstd_c = jnp.repeat(rstd_g, cs, axis=1)                     # (N, C)
    scale_c = (gamma * rstd_c).reshape(n, 1, c)
    shift_c = (beta - gamma * rstd_c * mean_c).reshape(n, 1, c)

    # ---- Pass 3: normalize + transpose back + residual (NCHW output) ----
    out_nchw = pl.pallas_call(
        groupnorm_residual_kernel,
        out_shape=jax.ShapeDtypeStruct((n, c, hw), jnp.float32),
        grid_spec=pltpu.PrefetchScalarGridSpec(
            num_scalar_prefetch=0,
            grid=(n, n_p),
            in_specs=[
                pl.BlockSpec((1, tp, c), lambda b, i: (b, i, 0)),   # y (attention out)
                pl.BlockSpec((1, c, tp), lambda b, i: (b, 0, i)),   # residual x (NCHW)
                pl.BlockSpec((1, 1, c), lambda b, i: (b, 0, 0)),    # per-channel scale
                pl.BlockSpec((1, 1, c), lambda b, i: (b, 0, 0)),    # per-channel shift
            ],
            out_specs=pl.BlockSpec((1, c, tp), lambda b, i: (b, 0, i)),
        ),
        compiler_params=pltpu.CompilerParams(
            dimension_semantics=("parallel", "parallel"),
            vmem_limit_bytes=vlim),
    )(y, x_nchw, scale_c, shift_c)

    return out_nchw.reshape(n, c, h, w)


def ref_forward(x, params):
    """Pure-JAX reference matching the PyTorch module."""
    n, c, h, w = x.shape
    hw = h * w
    xt = jnp.transpose(x.reshape(n, c, hw), (0, 2, 1))          # (n, hw, c)
    qkv = xt @ params["w_in"].T + params["b_in"]
    q, k, v = jnp.split(qkv, 3, axis=-1)
    scores = (q @ jnp.swapaxes(k, -1, -2)) / math.sqrt(c)
    p = jax.nn.softmax(scores, axis=-1)
    y = (p @ v) @ params["w_out"].T + params["b_out"]
    y = jnp.transpose(y, (0, 2, 1)).reshape(n, c, h, w)
    G = NUM_GROUPS
    yg = y.reshape(n, G, c // G, h, w)
    mean = yg.mean(axis=(2, 3, 4), keepdims=True)
    var = yg.var(axis=(2, 3, 4), keepdims=True)
    yn = ((yg - mean) / jnp.sqrt(var + EPS)).reshape(n, c, h, w)
    yn = yn * params["gamma"][None, :, None, None] + params["beta"][None, :, None, None]
    return yn + x


if __name__ == "__main__":
    # Small shapes: GroupNorm(32, C) needs C % 32 == 0 -> C=128 keeps every transposed
    # tile lane-aligned; spatial 16x16 gives HW=256, and tq=tk=32 exercises the
    # multi-tile flash/online-softmax path (8 KV tiles).
    N, C, H, W = 2, 128, 16, 16
    key = jax.random.PRNGKey(0)
    kx, k1, k2, k3, k4, k5, k6 = jax.random.split(key, 7)

    x = jax.random.normal(kx, (N, C, H, W), dtype=jnp.float32)
    params = {
        "w_in": jax.random.normal(k1, (3 * C, C), dtype=jnp.float32) / math.sqrt(C),
        "b_in": jax.random.normal(k2, (3 * C,), dtype=jnp.float32) * 0.02,
        "w_out": jax.random.normal(k3, (C, C), dtype=jnp.float32) / math.sqrt(C),
        "b_out": jax.random.normal(k4, (C,), dtype=jnp.float32) * 0.02,
        "gamma": 1.0 + 0.1 * jax.random.normal(k5, (C,), dtype=jnp.float32),
        "beta": 0.05 * jax.random.normal(k6, (C,), dtype=jnp.float32),
    }

    ref = jax.block_until_ready(ref_forward(x, params))

    # Full-f32 path, multi-tile flash: tight numerical check against the reference.
    out_f32 = jax.block_until_ready(
        vae_attention_block(x, params, compute_dtype=jnp.float32, tq=32, tk=32))
    assert out_f32.shape == (N, C, H, W)
    err_f32 = float(jnp.max(jnp.abs(out_f32 - ref)))
    assert err_f32 < 5e-4, f"f32 path max-abs error {err_f32}"

    # bf16-MXU-operand path with default tiling (perf default): f32 accumulation /
    # softmax / GroupNorm stats.  GroupNorm re-standardizes the low-variance attention
    # output, amplifying bf16 operand rounding, so this is a sanity check only — the
    # f32 path above is the tight correctness check.
    out_bf16 = jax.block_until_ready(
        vae_attention_block(x, params, compute_dtype=jnp.bfloat16))
    err_bf16 = float(jnp.max(jnp.abs(out_bf16 - ref)))
    assert err_bf16 < 0.5, f"bf16 path max-abs error {err_bf16}"

    print("KERNEL_OK")
</pallas_src>

<mosaic_0001>
module attributes {stable_mosaic.version = 11 : i64} {
  func.func @qkv_projection_kernel(%arg0: i32, %arg1: i32, %arg2: memref<1x128x256xf32, #tpu.memory_space<vmem>>, %arg3: memref<128x128xf32, #tpu.memory_space<vmem>>, %arg4: memref<128x128xf32, #tpu.memory_space<vmem>>, %arg5: memref<128x128xf32, #tpu.memory_space<vmem>>, %arg6: memref<1x128xf32, #tpu.memory_space<vmem>>, %arg7: memref<1x128xf32, #tpu.memory_space<vmem>>, %arg8: memref<1x128xf32, #tpu.memory_space<vmem>>, %arg9: memref<1x256x128xf32, #tpu.memory_space<vmem>>, %arg10: memref<1x256x128xf32, #tpu.memory_space<vmem>>, %arg11: memref<1x256x128xf32, #tpu.memory_space<vmem>>) attributes {dimension_semantics = [#tpu.dimension_semantics<parallel>, #tpu.dimension_semantics<parallel>], iteration_bounds = array<i64: 2, 1>, scalar_prefetch = 0 : i64, scratch_operands = 0 : i64, tpu.core_type = #tpu.core_type<tc>, window_params = [{transform_indices = @transform_0, window_bounds = array<i64: 1, 128, 256>}, {pipeline_mode = #tpu.pipeline_mode<synchronous>, transform_indices = @transform_1, window_bounds = array<i64: 128, 128>}, {pipeline_mode = #tpu.pipeline_mode<synchronous>, transform_indices = @transform_2, window_bounds = array<i64: 128, 128>}, {pipeline_mode = #tpu.pipeline_mode<synchronous>, transform_indices = @transform_3, window_bounds = array<i64: 128, 128>}, {pipeline_mode = #tpu.pipeline_mode<synchronous>, transform_indices = @transform_4, window_bounds = array<i64: 1, 128>}, {pipeline_mode = #tpu.pipeline_mode<synchronous>, transform_indices = @transform_5, window_bounds = array<i64: 1, 128>}, {pipeline_mode = #tpu.pipeline_mode<synchronous>, transform_indices = @transform_6, window_bounds = array<i64: 1, 128>}, {transform_indices = @transform_7, window_bounds = array<i64: 1, 256, 128>}, {transform_indices = @transform_8, window_bounds = array<i64: 1, 256, 128>}, {transform_indices = @transform_9, window_bounds = array<i64: 1, 256, 128>}]} {
    %c0 = arith.constant 0 : index
    %c0_0 = arith.constant 0 : index
    %c0_1 = arith.constant 0 : index
    %0 = vector.load %arg2[%c0, %c0_0, %c0_1] : memref<1x128x256xf32, #tpu.memory_space<vmem>>, vector<1x128x256xf32>
    %1 = vector.shape_cast %0 : vector<1x128x256xf32> to vector<128x256xf32>
    %2 = tpu.transpose %1, [1, 0] : vector<128x256xf32> -> vector<256x128xf32>
    %c0_2 = arith.constant 0 : index
    %c0_3 = arith.constant 0 : index
    %3 = vector.load %arg3[%c0_2, %c0_3] : memref<128x128xf32, #tpu.memory_space<vmem>>, vector<128x128xf32>
    %cst = arith.constant dense<0.000000e+00> : vector<256x128xf32>
    %4 = tpu.matmul %2, %3, %cst {dimension_numbers = #tpu.dot_dimension_numbers<[1], [0], [0], [1], [0, 0, 1, 1], [], []>} : vector<256x128xf32>, vector<128x128xf32>, vector<256x128xf32> -> vector<256x128xf32>
    %c0_4 = arith.constant 0 : index
    %c0_5 = arith.constant 0 : index
    %5 = vector.load %arg6[%c0_4, %c0_5] : memref<1x128xf32, #tpu.memory_space<vmem>>, vector<1x128xf32>
    %6 = vector.broadcast %5 : vector<1x128xf32> to vector<256x128xf32>
    %7 = arith.addf %4, %6 : vector<256x128xf32>
    %c0_6 = arith.constant 0 : index
    %c0_7 = arith.constant 0 : index
    %8 = vector.load %arg4[%c0_6, %c0_7] : memref<128x128xf32, #tpu.memory_space<vmem>>, vector<128x128xf32>
    %cst_8 = arith.constant dense<0.000000e+00> : vector<256x128xf32>
    %9 = tpu.matmul %2, %8, %cst_8 {dimension_numbers = #tpu.dot_dimension_numbers<[1], [0], [0], [1], [0, 0, 1, 1], [], []>} : vector<256x128xf32>, vector<128x128xf32>, vector<256x128xf32> -> vector<256x128xf32>
    %c0_9 = arith.constant 0 : index
    %c0_10 = arith.constant 0 : index
    %10 = vector.load %arg7[%c0_9, %c0_10] : memref<1x128xf32, #tpu.memory_space<vmem>>, vector<1x128xf32>
    %11 = vector.broadcast %10 : vector<1x128xf32> to vector<256x128xf32>
    %12 = arith.addf %9, %11 : vector<256x128xf32>
    %c0_11 = arith.constant 0 : index
    %c0_12 = arith.constant 0 : index
    %13 = vector.load %arg5[%c0_11, %c0_12] : memref<128x128xf32, #tpu.memory_space<vmem>>, vector<128x128xf32>
    %cst_13 = arith.constant dense<0.000000e+00> : vector<256x128xf32>
    %14 = tpu.matmul %2, %13, %cst_13 {dimension_numbers = #tpu.dot_dimension_numbers<[1], [0], [0], [1], [0, 0, 1, 1], [], []>} : vector<256x128xf32>, vector<128x128xf32>, vector<256x128xf32> -> vector<256x128xf32>
    %c0_14 = arith.constant 0 : index
    %c0_15 = arith.constant 0 : index
    %15 = vector.load %arg8[%c0_14, %c0_15] : memref<1x128xf32, #tpu.memory_space<vmem>>, vector<1x128xf32>
    %16 = vector.broadcast %15 : vector<1x128xf32> to vector<256x128xf32>
    %17 = arith.addf %14, %16 : vector<256x128xf32>
    %cst_16 = arith.constant 0.0883883461 : f32
    %18 = vector.broadcast %cst_16 : f32 to vector<256x128xf32>
    %19 = arith.mulf %7, %18 : vector<256x128xf32>
    %c0_17 = arith.constant 0 : index
    %c0_18 = arith.constant 0 : index
    %c0_19 = arith.constant 0 : index
    %20 = vector.load %arg9[%c0_17, %c0_18, %c0_19] : memref<1x256x128xf32, #tpu.memory_space<vmem>>, vector<1x256x128xf32>
    %21 = vector.shape_cast %20 : vector<1x256x128xf32> to vector<256x128xf32>
    %22 = vector.shape_cast %19 : vector<256x128xf32> to vector<1x256x128xf32>
    tpu.vector_store %arg9[%c0_17, %c0_18, %c0_19], %22 {strides = array<i32>} : memref<1x256x128xf32, #tpu.memory_space<vmem>>, vector<1x256x128xf32>,
    %c0_20 = arith.constant 0 : index
    %c0_21 = arith.constant 0 : index
    %c0_22 = arith.constant 0 : index
    %23 = vector.load %arg10[%c0_20, %c0_21, %c0_22] : memref<1x256x128xf32, #tpu.memory_space<vmem>>, vector<1x256x128xf32>
    %24 = vector.shape_cast %23 : vector<1x256x128xf32> to vector<256x128xf32>
    %25 = vector.shape_cast %12 : vector<256x128xf32> to vector<1x256x128xf32>
    tpu.vector_store %arg10[%c0_20, %c0_21, %c0_22], %25 {strides = array<i32>} : memref<1x256x128xf32, #tpu.memory_space<vmem>>, vector<1x256x128xf32>,
    %c0_23 = arith.constant 0 : index
    %c0_24 = arith.constant 0 : index
    %c0_25 = arith.constant 0 : index
    %26 = vector.load %arg11[%c0_23, %c0_24, %c0_25] : memref<1x256x128xf32, #tpu.memory_space<vmem>>, vector<1x256x128xf32>
    %27 = vector.shape_cast %26 : vector<1x256x128xf32> to vector<256x128xf32>
    %28 = vector.shape_cast %17 : vector<256x128xf32> to vector<1x256x128xf32>
    tpu.vector_store %arg11[%c0_23, %c0_24, %c0_25], %28 {strides = array<i32>} : memref<1x256x128xf32, #tpu.memory_space<vmem>>, vector<1x256x128xf32>,
    return
  }
  func.func @transform_0(%arg0: i32, %arg1: i32) -> (i32, i32, i32) {
    %c0_i32 = arith.constant 0 : i32
    %c0_i32_0 = arith.constant 0 : i32
    return %arg0, %c0_i32, %arg1 : i32, i32, i32
  }
  func.func @transform_1(%arg0: i32, %arg1: i32) -> (i32, i32) {
    %c0_i32 = arith.constant 0 : i32
    %c0_i32_0 = arith.constant 0 : i32
    %c0_i32_1 = arith.constant 0 : i32
    return %c0_i32, %c0_i32_0 : i32, i32
  }
  func.func @transform_2(%arg0: i32, %arg1: i32) -> (i32, i32) {
    %c0_i32 = arith.constant 0 : i32
    %c0_i32_0 = arith.constant 0 : i32
    %c0_i32_1 = arith.constant 0 : i32
    return %c0_i32, %c0_i32_0 : i32, i32
  }
  func.func @transform_3(%arg0: i32, %arg1: i32) -> (i32, i32) {
    %c0_i32 = arith.constant 0 : i32
    %c0_i32_0 = arith.constant 0 : i32
    %c0_i32_1 = arith.constant 0 : i32
    return %c0_i32, %c0_i32_0 : i32, i32
  }
  func.func @transform_4(%arg0: i32, %arg1: i32) -> (i32, i32) {
    %c0_i32 = arith.constant 0 : i32
    %c0_i32_0 = arith.constant 0 : i32
    %c0_i32_1 = arith.constant 0 : i32
    return %c0_i32, %c0_i32_0 : i32, i32
  }
  func.func @transform_5(%arg0: i32, %arg1: i32) -> (i32, i32) {
    %c0_i32 = arith.constant 0 : i32
    %c0_i32_0 = arith.constant 0 : i32
    %c0_i32_1 = arith.constant 0 : i32
    return %c0_i32, %c0_i32_0 : i32, i32
  }
  func.func @transform_6(%arg0: i32, %arg1: i32) -> (i32, i32) {
    %c0_i32 = arith.constant 0 : i32
    %c0_i32_0 = arith.constant 0 : i32
    %c0_i32_1 = arith.constant 0 : i32
    return %c0_i32, %c0_i32_0 : i32, i32
  }
  func.func @transform_7(%arg0: i32, %arg1: i32) -> (i32, i32, i32) {
    %c0_i32 = arith.constant 0 : i32
    %c0_i32_0 = arith.constant 0 : i32
    return %arg0, %arg1, %c0_i32 : i32, i32, i32
  }
  func.func @transform_8(%arg0: i32, %arg1: i32) -> (i32, i32, i32) {
    %c0_i32 = arith.constant 0 : i32
    %c0_i32_0 = arith.constant 0 : i32
    return %arg0, %arg1, %c0_i32 : i32, i32, i32
  }
  func.func @transform_9(%arg0: i32, %arg1: i32) -> (i32, i32, i32) {
    %c0_i32 = arith.constant 0 : i32
    %c0_i32_0 = arith.constant 0 : i32
    return %arg0, %arg1, %c0_i32 : i32, i32, i32
  }
}

</mosaic_0001>

<bundles_post_ra>
// kernel: tpu_custom_call.1
= control target key start
LH: loop header
LB: loop body
LE: loop exit
PB: predicated region body
PF: predicated region fallthrough
CT: control target
= control target key end

     0   :  { %s3304_s0 = inlined_call_operand.hbm [shape: f32[2,128,256], index: 0, kind: input, shape index: {}]   ;;  %s3305_s1 = inlined_call_operand.hbm [shape: f32[128,128], index: 1, kind: input, shape index: {}]   ;;  %s3306_s2 = inlined_call_operand.hbm [shape: f32[128,128], index: 2, kind: input, shape index: {}]   ;;  %s3307_s3 = inlined_call_operand.hbm [shape: f32[128,128], index: 3, kind: input, shape index: {}]   ;;  %s3308_s4 = inlined_call_operand.vmem [shape: f32[1,128], index: 4, kind: input, shape index: {}]   ;;  %s3309_s5 = inlined_call_operand.vmem [shape: f32[1,128], index: 5, kind: input, shape index: {}]   ;;  %s3310_s6 = inlined_call_operand.vmem [shape: f32[1,128], index: 6, kind: input, shape index: {}]   ;;  %s3311_s7 = inlined_call_operand.hbm [shape: f32[2,256,128], index: 7, kind: output, shape index: {0}]   ;;  %s3312_s8 = inlined_call_operand.hbm [shape: f32[2,256,128], index: 8, kind: output, shape index: {1}]   ;;  %s3313_s9 = inlined_call_operand.hbm [shape: f32[2,256,128], index: 9, kind: output, shape index: {2}]  }
   0x1   :  { %3319 = sst [smem:[#allocation21_spill]] %s3305_s1 }
   0x2   :  { %3320 = sst [smem:[#allocation22_spill]] %s3306_s2 }
   0x3   :  { %3321 = sst [smem:[#allocation23_spill]] %s3307_s3 }
   0x4   :  { %15 = vsyncpa [#allocation3], 0 }
   0x5   :  { %17 = vsyncpa [#allocation3 + $0x1], 0 }
   0x6   :  { %18 = vsyncpa [#allocation6], 0 }
   0x7   :  { %19 = vsyncpa [#allocation9], 0 }
   0x8   :  { %20 = vsyncpa [#allocation4], 0 }
   0x9   :  { %22 = vsyncpa [#allocation4 + $0x1], 0 }
   0xa   :  { %23 = vsyncpa [#allocation12], 0 }
   0xb   :  { %25 = vsyncpa [#allocation12 + $0x1], 0  ;;  %s2640_s30 = smov 0   ;;  %s2642_s10 = smov 0  }
   0xc   :  { %s2644_s11 = smov 0   ;;  %s2646_s12 = smov 0  }
   0xd   :  { %s2648_s13 = smov 0   ;;  %s2650_s14 = smov 0  }
   0xe LB: > { %s2671_s15 = sadd.s32 4294967295, %s2575_s14   ;;  %s3315_s16 = sadd.s32 4294967294, %s2575_s14   ;;  %s2575_s14 = sphi %s2650_s14, %s31_s14   ;;  %s2571_s13 = sphi %s2648_s13, %s3348_s13   ;;  %s2567_s12 = sphi %s2646_s12, %s3347_s12   ;;  %s2563_s11 = sphi %s2644_s11, %s3346_s11   ;;  %s2559_s10 = sphi %s2642_s10, %s3345_s10   ;;  %s2555_s30 = sphi %s2640_s30, %s3344_s30  }
   0xf   : > { %p65_p0 = scmp.ne.s32.totalorder %s2559_s10, %s2555_s30  ;;  %p3314_p1 = scmp.eq.s32.totalorder %s2671_s15, 0 }
  0x10   : > { %p223_p3 = scmp.eq.s32.totalorder %s3315_s16, 1  ;;  %p1654_p5 = scmp.ge.s32.totalorder %s2575_s14, 1 }
  0x11   : > { %p2682_p4 = por %p3314_p1, %p65_p0  ;;  %p286_p7 = scmp.lt.s32.totalorder %s2575_s14, 3 }
  0x12   : > { %p2687_p6 = por %p223_p3, %p65_p0  ;;  %s2577_s20 = smov [#allocation5]  }
  0x13   : > { %s3322_s17 = scalar_select %p2682_p4, 1, 0 }
  0x14   : > { %s3323_s18 = scalar_select %p2687_p6, 1, 0 }
  0x15   : > { %p2692_p8 = pnand %p1654_p5, %p286_p7  ;;  %s298_s21 = sshll.u32 %s2577_s20, 4  ;;  %s299_s21 = int_to_ptr.vmem [resolvable:$true] %s298_s21 }
  0x16   : > { %3324 = sst [smem:[#allocation19_spill]] %s3323_s18  ;;  %s2578_s23 = smov [#allocation7]  }
  0x17   : > { %p2124_p9 = pneg %p2692_p8  ;;  %s311_s24 = sshll.u32 %s2578_s23, 4  ;;  %s312_s24 = int_to_ptr.vmem [resolvable:$true] %s311_s24 }
  0x18   : > { %s2579_s25 = smov [#allocation8]   ;;  %s2336_s27 = scalar_lea.vmem %s299_s21, 2048 }
  0x19   : > { %p2701_p11 = pnand %p2124_p9, %p3314_p1  ;;  %s324_s26 = sshll.u32 %s2579_s25, 4  ;;  %s325_s26 = int_to_ptr.vmem [resolvable:$true] %s324_s26 }
  0x1a   : > { %p2337_p13 = scmp.ne.s32.totalorder %s299_s21, %s2336_s27  ;;  %p2344_p5 = scmp.lt.s32.totalorder %s299_s21, %s299_s21 }
  0x1b   : > { %p2327_p12 = pneg %p2701_p11  ;;  %p2345_p7 = scmp.lt.s32.totalorder %s2336_s27, %s2336_s27 }
  0x1d   : > { %p2339_p0 = pnand %p2337_p13, %p2327_p12  ;;  %p2346_p9 = por %p2345_p7, %p2344_p5 }
  0x1f   : > { %p2340_p3 = pneg %p2339_p0 }
  0x21   : > { %p2347_p10 = pnand %p2346_p9, %p2340_p3 }
  0x23   : > { %2350 = shalt.err (!%p2347_p10)
}
  0x24   : > { %s2580_s28 = smov 128   ;;  %s2581_s29 = smov 8  }
  0x25   : > { %s3327_s1 = sld [smem:[#allocation21_spill]]  ;;  %s2362_s25 = scalar_lea.vmem %s312_s24, 2048 }
  0x26   : > { %p2363_p1 = scmp.ne.s32.totalorder %s312_s24, %s2362_s25  ;;  %p2370_p2 = scmp.lt.s32.totalorder %s312_s24, %s312_s24 }
  0x27   : > { %p2371_p6 = scmp.lt.s32.totalorder %s2362_s25, %s2362_s25 }
  0x28   : > { %p2365_p13 = pnand %p2363_p1, %p2327_p12 }
  0x29   : > { %p2372_p5 = por %p2371_p6, %p2370_p2 }
  0x2a   : > { %p2366_p0 = pneg %p2365_p13 }
  0x2b   : > { %2127 = dma.hbm_to_vmem [thread:$0]  (!%p2701_p11), %s3327_s1, 2048, %s299_s21, [#allocation6], %s2580_s28, %s2580_s28, %s2581_s29  }
  0x2c   : > { %p2373_p3 = pnand %p2372_p5, %p2366_p0 }
  0x2e   : > { %2376 = shalt.err (!%p2373_p3)
}
  0x2f   : > { %s3328_s2 = sld [smem:[#allocation22_spill]]  ;;  %s2388_s21 = scalar_lea.vmem %s325_s26, 2048 }
  0x30   : > { %p2389_p10 = scmp.ne.s32.totalorder %s325_s26, %s2388_s21  ;;  %p2396_p9 = scmp.lt.s32.totalorder %s325_s26, %s325_s26 }
  0x31   : > { %p2397_p13 = scmp.lt.s32.totalorder %s2388_s21, %s2388_s21 }
  0x32   : > { %p2391_p7 = pnand %p2389_p10, %p2327_p12 }
  0x33   : > { %p2398_p4 = por %p2397_p13, %p2396_p9 }
  0x34   : > { %p2392_p1 = pneg %p2391_p7 }
  0x35   : > { %2130 = dma.hbm_to_vmem [thread:$0]  (!%p2701_p11), %s3328_s2, 2048, %s312_s24, [#allocation6], %s2580_s28, %s2580_s28, %s2581_s29  }
  0x36   : > { %p2399_p2 = pnand %p2398_p4, %p2392_p1 }
  0x38   : > { %2402 = shalt.err (!%p2399_p2)
}
  0x39   : > { %s3329_s3 = sld [smem:[#allocation23_spill]]  ;;  %s52_s16 = sadd.s32 1, %s2563_s11 }
  0x3a   : > { %s43_s24 = sadd.s32 1, %s2571_s13  ;;  %p59_p4 = scmp.ne.s32.totalorder %s2563_s11, %s2559_s10 }
  0x3b   : > { %p45_p6 = scmp.ge.s32.totalorder %s43_s24, 2  ;;  %p60_p12 = scmp.eq.s32.totalorder %s2575_s14, 0 }
  0x3c   : > { %p3330_p0 = scmp.eq.s32.totalorder %s2671_s15, 1  ;;  %p2151_p3 = scmp.lt.s32.totalorder %s2575_s14, 2 }
  0x3d   : > { %s3350_s24 = smov (%p45_p6, %s43_s24), 0  ;;  %p61_p10 = por %p60_p12, %p59_p4 }
  0x3e   : > { %p2738_p5 = por %p3330_p0, %p59_p4  ;;  %3332 = sst [smem:[#allocation20_spill]] %s3350_s24 }
  0x3f   : > { %2133 = dma.hbm_to_vmem [thread:$0]  (!%p2701_p11), %s3329_s3, 2048, %s325_s26, [#allocation9], %s2580_s28, %s2580_s28, %s2581_s29  }
  0x40   : > { %s347_s25 = sand.u32 1, %s2563_s11   ;;  %s47_s27 = ssub.s32 %s2571_s13, %s3350_s24 }
  0x41   : > { %p50_p7 = scmp.eq.s32.totalorder %s47_s27, 0  ;;  %s1659_s26 = sshll.u32 %s347_s25, 8 }
  0x42   : > { %s1684_s28 = sshll.u32 %s2571_s13, 12  ;;  %s351_s1 = scalar_lea.vmem [#allocation2], %s1659_s26 }
  0x43   : > { %s2750_s29 = scalar_select %p50_p7, %s2563_s11, %s52_s16  }
  0x44   : > { %s359_s23 = scalar_lea.hbm %s3304_s0, %s1684_s28  ;;  %s360_s2 = sshll.u32 %s351_s1, 4  ;;  %s361_s2 = int_to_ptr.vmem [resolvable:$true] %s360_s2 }
  0x45   : > { %p2757_p11 = pnand %p2151_p3, %p61_p10  ;;  %s348_s18 = scalar_lea.sflag [#allocation3], %s347_s25 }
  0x46   : > { %s2416_s27 = scalar_lea.vmem %s361_s2, 4096  ;;  %s2582_s16 = smov [#allocation2]  }
  0x47   : > { %p2405_p1 = pneg %p2757_p11  ;;  %p2417_p9 = scmp.ne.s32.totalorder %s361_s2, %s2416_s27 }
  0x48   : > { %s2421_s24 = sshll.u32 %s2582_s16, 4  ;;  %s2422_s24 = int_to_ptr.vmem [resolvable:$false] %s2421_s24 }
  0x49   : > { %p2419_p13 = pnand %p2417_p9, %p2405_p1  ;;  %s2423_s28 = scalar_lea.vmem %s2422_s24, 8192 }
  0x4a   : > { %p2424_p4 = scmp.lt.s32.totalorder %s361_s2, %s2422_s24  ;;  %p2425_p6 = scmp.lt.s32.totalorder %s2423_s28, %s2416_s27 }
  0x4b   : > { %p2420_p2 = pneg %p2419_p13 }
  0x4c   : > { %p2426_p12 = por %p2425_p6, %p2424_p4 }
  0x4e   : > { %p2427_p0 = pnand %p2426_p12, %p2420_p2 }
  0x50   : > { %2430 = shalt.err (!%p2427_p0)
}
  0x51   : > { %s2583_s1 = smov 256   ;;  %s2584_s26 = smov 16  }
  0x52   : > { %2137 = dma.hbm_to_vmem [thread:$0]  (!%p2757_p11), %s359_s23, 4096, %s361_s2, %s348_s18, %s2583_s1, %s2583_s1, %s2584_s26  }
  0x53   : > { %372 = sbr.rel (%p2692_p8) target bundleno = 598 (0x256), region = 48  ;;  %s2768_s25 = sand.u32 (!%p2692_p8), 1, %s2559_s10  }
  0x54   : > { %s2771_s21 = sshll.u32 (!%p2692_p8), %s2768_s25, 8  ;;  %s375_s24 = scalar_lea.sflag (!%p2692_p8), [#allocation3], %s2768_s25 }
  0x55   : > { %s2775_s20 = scalar_lea.vmem (!%p2692_p8), [#allocation2], %s2771_s21  ;;  %p3334_p3 = scmp.ne.s32.totalorder (!%p2692_p8), %s3322_s17, 0 }
  0x58   : > { %2534 = dma.done.wait (%p3334_p3), %s375_s24, 4096  }
  0x59   : > { %2536 = vsyncadd (%p3334_p3), %s375_s24, 4294963200  ;;  %p3335_p10 = scmp.eq.s32.totalorder %s2671_s15, 0 }
  0x5b   : > { %2538 = dma.done.wait (%p3335_p10), [#allocation6], 4096   ;;  %p3336_p8 = pmov %p3335_p10 }
  0x5d   : > { %2540 = vsyncadd (%p3336_p8), [#allocation6], 4294963200  ;;  %p3337_p7 = pmov %p3336_p8 }
  0x5f   : > { %2542 = dma.done.wait (%p3337_p7), [#allocation9], 2048   ;;  %p3338_p11 = pmov %p3337_p7 }
  0x60   : > { %v439_v0 = vld [vmem:[%s2775_s20] sm:$0xff]  ;;  %v440_v1 = vld [vmem:[%s2775_s20 + $0x8] sm:$0xff]  ;;  %v441_v2 = vld [vmem:[%s2775_s20 + $0x10] sm:$0xff]  ;;  %s2966_s17 = scalar_lea.vmem [#allocation10], %s2771_s21  ;;  %s3033_s16 = sshll.u32 %s2567_s12, 12 }
  0x61   : > { %2544 = vsyncadd (%p3338_p11), [#allocation9], 4294965248  ;;  %v2213_v3 = vpack.i.bf16 %v439_v0, %v440_v1  ;;  %v442_v4 = vld [vmem:[%s2775_s20 + $0x18] sm:$0xff]  ;;  %v443_v6 = vld [vmem:[%s2775_s20 + $0x20] sm:$0xff]  ;;  %s1433_s28 = sshll.u32 %s2966_s17, 4  ;;  %s3046_s26 = scalar_lea.hbm %s3311_s7, %s3033_s16  ;;  %s3048_s28 = int_to_ptr.vmem [resolvable:$true] %s1433_s28 }
  0x62   : > { %v2215_v5 = vpack.i.bf16 %v441_v2, %v442_v4  ;;  %v444_v7 = vld [vmem:[%s2775_s20 + $0x28] sm:$0xff]  ;;  %v445_v9 = vld [vmem:[%s2775_s20 + $0x30] sm:$0xff]  ;;  %v446_v10 = vld [vmem:[%s2775_s20 + $0x38] sm:$0xff]  ;;  %s3053_s24 = scalar_lea.vmem [#allocation11], %s2771_s21  ;;  %s1408_s2 = scalar_lea.sflag [#allocation4], %s2768_s25 }
  0x63   : > { %2214 = vxpose.xlu0.b32.start [1/16] %v2213_v3, 128  ;;  %v2217_v8 = vpack.i.bf16 %v443_v6, %v444_v7  ;;  %v550_v11 = vld [vmem:[#allocation5 + $0x78] sm:$0xff]  ;;  %v2219_v12 = vpack.i.bf16 %v445_v9, %v446_v10  ;;  %v549_v13 = vld [vmem:[#allocation5 + $0x70] sm:$0xff]  ;;  %v447_v14 = vld [vmem:[%s2775_s20 + $0x40] sm:$0xff]  ;;  %s2431_s3 = scalar_lea.vmem %s3048_s28, 4096 }
  0x64   : > { %1832 = vmatprep.subr.mxu0 %v550_v11  ;;  %v448_v15 = vld [vmem:[%s2775_s20 + $0x48] sm:$0xff]  ;;  %2072 = vmatprep.subr.mxu1 %v550_v11  ;;  %v547_v18 = vld [vmem:[#allocation5 + $0x60] sm:$0xff]  ;;  %v449_v19 = vld [vmem:[%s2775_s20 + $0x50] sm:$0xff]  ;;  %p2432_p1 = scmp.ne.s32.totalorder %s3048_s28, %s2431_s3 }
  0x65   : > { %1833 = vmatpush3.msra.mxu0 %v550_v11  ;;  %2088 = vmatpush3.msra.mxu1 %v550_v11  ;;  %v548_v16 = vld [vmem:[#allocation5 + $0x68] sm:$0xff]  ;;  %v2221_v17 = vpack.i.bf16 %v447_v14, %v448_v15  ;;  %v450_v20 = vld [vmem:[%s2775_s20 + $0x58] sm:$0xff]  ;;  %v545_v23 = vld [vmem:[#allocation5 + $0x50] sm:$0xff] }
  0x66   : > { %1834 = vmatprep.subr.mxu0 %v549_v13  ;;  %2073 = vmatprep.subr.mxu1 %v549_v13  ;;  %v546_v21 = vld [vmem:[#allocation5 + $0x58] sm:$0xff]  ;;  %v2223_v22 = vpack.i.bf16 %v449_v19, %v450_v20  ;;  %v451_v24 = vld [vmem:[%s2775_s20 + $0x60] sm:$0xff]  ;;  %v452_v25 = vld [vmem:[%s2775_s20 + $0x68] sm:$0xff]  ;;  %p2433_p9 = pnand %p2432_p1, %p2738_p5 }
  0x67   : > { %2216 = vxpose.xlu0.b32.cont [2/16] %v2215_v5, 128  ;;  %1835 = vmatpush3.msra.mxu0 %v549_v13  ;;  %v544_v26 = vld [vmem:[#allocation5 + $0x48] sm:$0xff]  ;;  %v2225_v27 = vpack.i.bf16 %v451_v24, %v452_v25  ;;  %v453_v28 = vld [vmem:[%s2775_s20 + $0x70] sm:$0xff]  ;;  %v454_v29 = vld [vmem:[%s2775_s20 + $0x78] sm:$0xff] }
  0x68   : > { %2089 = vmatpush3.msra.mxu1 %v549_v13  ;;  %1836 = vmatprep.subr.mxu0 %v548_v16  ;;  %v543_v30 = vld [vmem:[#allocation5 + $0x40] sm:$0xff]  ;;  %v542_v31 = vld [vmem:[#allocation5 + $0x38] sm:$0xff]  ;;  %v2227_v32 = vpack.i.bf16 %v453_v28, %v454_v29  ;;  %v456_v34 = vld [vmem:[%s2775_s20 + $0x88] sm:$0xff]  ;;  %p2434_p13 = pneg %p2433_p9 }
  0x69   : > { %2074 = vmatprep.subr.mxu1 %v548_v16  ;;  %1837 = vmatpush3.msra.mxu0 %v548_v16  ;;  %v455_v33 = vld [vmem:[%s2775_s20 + $0x80] sm:$0xff]  ;;  %v541_v35 = vld [vmem:[#allocation5 + $0x30] sm:$0xff]  ;;  %v540_v37 = vld [vmem:[#allocation5 + $0x28] sm:$0xff] }
  0x6a   : > { %2090 = vmatpush3.msra.mxu1 %v548_v16  ;;  %1838 = vmatprep.subr.mxu0 %v547_v18  ;;  %v2229_v36 = vpack.i.bf16 %v455_v33, %v456_v34  ;;  %v457_v38 = vld [vmem:[%s2775_s20 + $0x90] sm:$0xff]  ;;  %v458_v39 = vld [vmem:[%s2775_s20 + $0x98] sm:$0xff]  ;;  %v539_v40 = vld [vmem:[#allocation5 + $0x20] sm:$0xff] }
  0x6b   : > { %2218 = vxpose.xlu0.b32.cont [3/16] %v2217_v8, 128  ;;  %2075 = vmatprep.subr.mxu1 %v547_v18  ;;  %v2231_v41 = vpack.i.bf16 %v457_v38, %v458_v39  ;;  %v538_v42 = vld [vmem:[#allocation5 + $0x18] sm:$0xff]  ;;  %v459_v43 = vld [vmem:[%s2775_s20 + $0xa0] sm:$0xff]  ;;  %v460_v44 = vld [vmem:[%s2775_s20 + $0xa8] sm:$0xff] }
  0x6c   : > { %1839 = vmatpush3.msra.mxu0 %v547_v18  ;;  %2091 = vmatpush3.msra.mxu1 %v547_v18  ;;  %v537_v45 = vld [vmem:[#allocation5 + $0x10] sm:$0xff]  ;;  %v2233_v46 = vpack.i.bf16 %v459_v43, %v460_v44  ;;  %v462_v48 = vld [vmem:[%s2775_s20 + $0xb8] sm:$0xff]  ;;  %v536_v49 = vld [vmem:[#allocation5 + $0x8] sm:$0xff] }
  0x6d   : > { %1840 = vmatprep.subr.mxu0 %v546_v21  ;;  %2076 = vmatprep.subr.mxu1 %v546_v21  ;;  %v461_v47 = vld [vmem:[%s2775_s20 + $0xb0] sm:$0xff]  ;;  %v535_v50 = vld [vmem:[#allocation5] sm:$0xff]  ;;  %v464_v53 = vld [vmem:[%s2775_s20 + $0xc8] sm:$0xff] }
  0x6e   : > { %1841 = vmatpush3.msra.mxu0 %v546_v21  ;;  %2092 = vmatpush3.msra.mxu1 %v546_v21  ;;  %v2235_v51 = vpack.i.bf16 %v461_v47, %v462_v48  ;;  %v463_v52 = vld [vmem:[%s2775_s20 + $0xc0] sm:$0xff]  ;;  %v798_v54 = vld [vmem:[#allocation7 + $0x78] sm:$0xff]  ;;  %v465_v57 = vld [vmem:[%s2775_s20 + $0xd0] sm:$0xff] }
  0x6f   : > { %2220 = vxpose.xlu0.b32.cont [4/16] %v2219_v12, 128  ;;  %1842 = vmatprep.subr.mxu0 %v545_v23  ;;  %v1046_v55 = vld [vmem:[#allocation8 + $0x78] sm:$0xff]  ;;  %v2237_v56 = vpack.i.bf16 %v463_v52, %v464_v53  ;;  %v467_v60 = vld [vmem:[%s2775_s20 + $0xe0] sm:$0xff]  ;;  %v468_v61 = vld [vmem:[%s2775_s20 + $0xe8] sm:$0xff] }
  0x70   : > { %2077 = vmatprep.subr.mxu1 %v545_v23  ;;  %1843 = vmatpush3.msra.mxu0 %v545_v23  ;;  %v466_v58 = vld [vmem:[%s2775_s20 + $0xd8] sm:$0xff]  ;;  %v2241_v62 = vpack.i.bf16 %v467_v60, %v468_v61  ;;  %v469_v63 = vld [vmem:[%s2775_s20 + $0xf0] sm:$0xff]  ;;  %v796_v13 = vld [vmem:[#allocation7 + $0x68] sm:$0xff] }
  0x71   : > { %2093 = vmatpush3.msra.mxu1 %v545_v23  ;;  %1844 = vmatprep.subr.mxu0 %v544_v26  ;;  %v2239_v59 = vpack.i.bf16 %v465_v57, %v466_v58  ;;  %v470_v0 = vld [vmem:[%s2775_s20 + $0xf8] sm:$0xff]  ;;  %v797_v8 = vld [vmem:[#allocation7 + $0x70] sm:$0xff]  ;;  %v1044_v14 = vld [vmem:[#allocation8 + $0x68] sm:$0xff]  ;;  %s3057_s20 = scalar_lea.vmem [#allocation13], %s2771_s21 }
  0x72   : > { %2078 = vmatprep.subr.mxu1 %v544_v26  ;;  %1845 = vmatpush3.msra.mxu0 %v544_v26  ;;  %v2243_v1 = vpack.i.bf16 %v469_v63, %v470_v0  ;;  %v1045_v9 = vld [vmem:[#allocation8 + $0x70] sm:$0xff]  ;;  %v795_v15 = vld [vmem:[#allocation7 + $0x60] sm:$0xff]  ;;  %v794_v20 = vld [vmem:[#allocation7 + $0x58] sm:$0xff] }
  0x73   : > { %2222 = vxpose.xlu0.b32.cont [5/16] %v2221_v17, 128  ;;  %2094 = vmatpush3.msra.mxu1 %v544_v26  ;;  %v1043_v16 = vld [vmem:[#allocation8 + $0x60] sm:$0xff]  ;;  %v1042_v21 = vld [vmem:[#allocation8 + $0x58] sm:$0xff]  ;;  %v793_v25 = vld [vmem:[#allocation7 + $0x50] sm:$0xff] }
  0x74   : > { %1846 = vmatprep.subr.mxu0 %v543_v30  ;;  %2079 = vmatprep.subr.mxu1 %v543_v30  ;;  %v1041_v26 = vld [vmem:[#allocation8 + $0x50] sm:$0xff]  ;;  %v1040_v28 = vld [vmem:[#allocation8 + $0x48] sm:$0xff]  ;;  %v1039_v33 = vld [vmem:[#allocation8 + $0x40] sm:$0xff] }
  0x75   : > { %1847 = vmatpush3.msra.mxu0 %v543_v30  ;;  %2095 = vmatpush3.msra.mxu1 %v543_v30  ;;  %v1038_v38 = vld [vmem:[#allocation8 + $0x38] sm:$0xff]  ;;  %v789_v39 = vld [vmem:[#allocation7 + $0x30] sm:$0xff]  ;;  %v788_v44 = vld [vmem:[#allocation7 + $0x28] sm:$0xff] }
  0x76   : > { %1848 = vmatprep.subr.mxu0 %v542_v31  ;;  %2080 = vmatprep.subr.mxu1 %v542_v31  ;;  %v1034_v52 = vld [vmem:[#allocation8 + $0x18] sm:$0xff]  ;;  %v1033_v57 = vld [vmem:[#allocation8 + $0x10] sm:$0xff]  ;;  %v784_v61 = vld [vmem:[#allocation7 + $0x8] sm:$0xff] }
  0x77   : > { %2224 = vxpose.xlu0.b32.cont [6/16] %v2223_v22, 128  ;;  %1849 = vmatpush3.msra.mxu0 %v542_v31  ;;  %v783_v63 = vld [vmem:[#allocation7] sm:$0xff] }
  0x78   : > { %2096 = vmatpush3.msra.mxu1 %v542_v31  ;;  %1850 = vmatprep.subr.mxu0 %v541_v35  ;;  %v1031_v0 = vld [vmem:[#allocation8] sm:$0xff] }
  0x79   : > { %2081 = vmatprep.subr.mxu1 %v541_v35  ;;  %1851 = vmatpush3.msra.mxu0 %v541_v35 }
  0x7a   : > { %2097 = vmatpush3.msra.mxu1 %v541_v35  ;;  %1852 = vmatprep.subr.mxu0 %v540_v37 }
  0x7b   : > { %2226 = vxpose.xlu0.b32.cont [7/16] %v2225_v27, 128  ;;  %2082 = vmatprep.subr.mxu1 %v540_v37  ;;  %v792_v27 = vld [vmem:[#allocation7 + $0x48] sm:$0xff] }
  0x7c   : > { %1853 = vmatpush3.msra.mxu0 %v540_v37  ;;  %2098 = vmatpush3.msra.mxu1 %v540_v37  ;;  %v790_v37 = vld [vmem:[#allocation7 + $0x38] sm:$0xff] }
  0x7d   : > { %1854 = vmatprep.subr.mxu0 %v539_v40  ;;  %2083 = vmatprep.subr.mxu1 %v539_v40 }
  0x7e   : > { %1855 = vmatpush3.msra.mxu0 %v539_v40  ;;  %2099 = vmatpush3.msra.mxu1 %v539_v40  ;;  %v1037_v40 = vld [vmem:[#allocation8 + $0x30] sm:$0xff] }
  0x7f   : > { %2228 = vxpose.xlu0.b32.cont [8/16] %v2227_v32, 128  ;;  %1856 = vmatprep.subr.mxu0 %v538_v42  ;;  %v791_v32 = vld [vmem:[#allocation7 + $0x40] sm:$0xff] }
  0x80   : > { %2084 = vmatprep.subr.mxu1 %v538_v42  ;;  %1857 = vmatpush3.msra.mxu0 %v538_v42 }
  0x81   : > { %2100 = vmatpush3.msra.mxu1 %v538_v42  ;;  %1858 = vmatprep.subr.mxu0 %v537_v45 }
  0x82   : > { %2085 = vmatprep.subr.mxu1 %v537_v45  ;;  %1859 = vmatpush3.msra.mxu0 %v537_v45 }
  0x83   : > { %2230 = vxpose.xlu0.b32.cont [9/16] %v2229_v36, 128  ;;  %2101 = vmatpush3.msra.mxu1 %v537_v45  ;;  %v1036_v45 = vld [vmem:[#allocation8 + $0x28] sm:$0xff] }
  0x84   : > { %1860 = vmatprep.subr.mxu0 %v536_v49  ;;  %2086 = vmatprep.subr.mxu1 %v536_v49 }
  0x85   : > { %1861 = vmatpush3.msra.mxu0 %v536_v49  ;;  %2102 = vmatpush3.msra.mxu1 %v536_v49  ;;  %v787_v49 = vld [vmem:[#allocation7 + $0x20] sm:$0xff] }
  0x86   : > { %1862 = vmatprep.subr.mxu0 %v535_v50  ;;  %2087 = vmatprep.subr.mxu1 %v535_v50 }
  0x87   : > { %2232 = vxpose.xlu0.b32.cont [10/16] %v2231_v41, 128  ;;  %1863 = vmatpush3.msra.mxu0 %v535_v50 }
  0x88   : > { %2103 = vmatpush3.msra.mxu1 %v535_v50  ;;  %1992 = vmatprep.subr.mxu0 %v1046_v55  ;;  %v1035_v50 = vld [vmem:[#allocation8 + $0x20] sm:$0xff] }
  0x89   : > { %1912 = vmatprep.subr.mxu1 %v798_v54 }
  0x8b   : > { %2234 = vxpose.xlu0.b32.cont [11/16] %v2233_v46, 128 }
  0x8f   : > { %2236 = vxpose.xlu0.b32.cont [12/16] %v2235_v51, 128  ;;  %v786_v51 = vld [vmem:[#allocation7 + $0x18] sm:$0xff] }
  0x93   : > { %2238 = vxpose.xlu0.b32.cont [13/16] %v2237_v56, 128  ;;  %v785_v56 = vld [vmem:[#allocation7 + $0x10] sm:$0xff] }
  0x97   : > { %2240 = vxpose.xlu0.b32.cont [14/16] %v2239_v59, 128 }
  0x9b   : > { %2242 = vxpose.xlu0.b32.cont [15/16] %v2241_v62, 128  ;;  %v1032_v62 = vld [vmem:[#allocation8 + $0x8] sm:$0xff] }
  0x9f   : > { %2244 = vxpose.xlu0.b32.end [16/16] %v2243_v1, 128 }
  0xdf   : > { %v2245_v2 = vpop.trf.xlu0 }
  0xe0   : > { %v2821_v3 = vunpack.i.h.bf16 %v2245_v2  ;;  %v2823_v4 = vunpack.i.l.bf16 %v2245_v2 }
  0xe2   : > { %1864 = vmatprep.mubr.f32.mxu0 %v2821_v3  ;;  %1888 = vmatprep.mubr.f32.mxu1 %v2823_v4 }
  0xe3   : > { %v2250_v5 = vpop.trf.xlu0 }
  0xe4   : > { %v2827_v6 = vunpack.i.h.bf16 %v2250_v5  ;;  %v2829_v7 = vunpack.i.l.bf16 %v2250_v5 }
  0xe6   : > { %1865 = vmatmul.mubr.f32.vlgmr.msra.gmra.mxu0 %v2827_v6  ;;  %1889 = vmatmul.mubr.f32.vlgmr.msra.gmra.mxu1 %v2829_v7 }
  0xe7   : > { %v2255_v10 = vpop.trf.xlu0  ;;  %1913 = vmatpush3.msra.mxu1 %v798_v54  ;;  %1993 = vmatpush3.msra.mxu0 %v1046_v55 }
  0xe8   : > { %v2833_v11 = vunpack.i.h.bf16 %v2255_v10  ;;  %v2835_v12 = vunpack.i.l.bf16 %v2255_v10  ;;  %1914 = vmatprep.subr.mxu1 %v797_v8  ;;  %1994 = vmatprep.subr.mxu0 %v1045_v9 }
  0xe9   : > { %1915 = vmatpush3.msra.mxu1 %v797_v8  ;;  %1995 = vmatpush3.msra.mxu0 %v1045_v9 }
  0xea   : > { %1867 = vmatprep.mubr.f32.mxu0 %v2833_v11  ;;  %1891 = vmatprep.mubr.f32.mxu1 %v2835_v12 }
  0xeb   : > { %v2260_v17 = vpop.trf.xlu0  ;;  %1916 = vmatprep.subr.mxu1 %v796_v13  ;;  %1996 = vmatprep.subr.mxu0 %v1044_v14 }
  0xec   : > { %v2839_v18 = vunpack.i.h.bf16 %v2260_v17  ;;  %v2841_v19 = vunpack.i.l.bf16 %v2260_v17  ;;  %1917 = vmatpush3.msra.mxu1 %v796_v13  ;;  %1997 = vmatpush3.msra.mxu0 %v1044_v14 }
  0xed   : > { %1918 = vmatprep.subr.mxu1 %v795_v15  ;;  %1998 = vmatprep.subr.mxu0 %v1043_v16 }
  0xee   : > { %1868 = vmatmul.mubr.f32.gmra.mxu0 %v2839_v18  ;;  %1892 = vmatmul.mubr.f32.gmra.mxu1 %v2841_v19 }
  0xef   : > { %v2265_v22 = vpop.trf.xlu0  ;;  %1919 = vmatpush3.msra.mxu1 %v795_v15  ;;  %1999 = vmatpush3.msra.mxu0 %v1043_v16 }
  0xf0   : > { %v2845_v23 = vunpack.i.h.bf16 %v2265_v22  ;;  %v2847_v24 = vunpack.i.l.bf16 %v2265_v22  ;;  %1920 = vmatprep.subr.mxu1 %v794_v20  ;;  %2000 = vmatprep.subr.mxu0 %v1042_v21 }
  0xf1   : > { %1921 = vmatpush3.msra.mxu1 %v794_v20  ;;  %2001 = vmatpush3.msra.mxu0 %v1042_v21 }
  0xf2   : > { %1870 = vmatprep.mubr.f32.mxu0 %v2845_v23  ;;  %1894 = vmatprep.mubr.f32.mxu1 %v2847_v24 }
  0xf3   : > { %v2270_v29 = vpop.trf.xlu0  ;;  %1922 = vmatprep.subr.mxu1 %v793_v25  ;;  %2002 = vmatprep.subr.mxu0 %v1041_v26 }
  0xf4   : > { %v2851_v30 = vunpack.i.h.bf16 %v2270_v29  ;;  %v2853_v31 = vunpack.i.l.bf16 %v2270_v29  ;;  %1923 = vmatpush3.msra.mxu1 %v793_v25  ;;  %2003 = vmatpush3.msra.mxu0 %v1041_v26 }
  0xf5   : > { %1924 = vmatprep.subr.mxu1 %v792_v27  ;;  %2004 = vmatprep.subr.mxu0 %v1040_v28 }
  0xf6   : > { %1871 = vmatmul.mubr.f32.gmra.mxu0 %v2851_v30  ;;  %1895 = vmatmul.mubr.f32.gmra.mxu1 %v2853_v31 }
  0xf7   : > { %v2275_v34 = vpop.trf.xlu0  ;;  %1925 = vmatpush3.msra.mxu1 %v792_v27  ;;  %2005 = vmatpush3.msra.mxu0 %v1040_v28 }
  0xf8   : > { %v2857_v35 = vunpack.i.h.bf16 %v2275_v34  ;;  %v2859_v36 = vunpack.i.l.bf16 %v2275_v34  ;;  %1926 = vmatprep.subr.mxu1 %v791_v32  ;;  %2006 = vmatprep.subr.mxu0 %v1039_v33 }
  0xf9   : > { %1927 = vmatpush3.msra.mxu1 %v791_v32  ;;  %2007 = vmatpush3.msra.mxu0 %v1039_v33 }
  0xfa   : > { %1873 = vmatprep.mubr.f32.mxu0 %v2857_v35  ;;  %1897 = vmatprep.mubr.f32.mxu1 %v2859_v36 }
  0xfb   : > { %v2280_v41 = vpop.trf.xlu0  ;;  %1928 = vmatprep.subr.mxu1 %v790_v37  ;;  %2008 = vmatprep.subr.mxu0 %v1038_v38 }
  0xfc   : > { %v2863_v42 = vunpack.i.h.bf16 %v2280_v41  ;;  %v2865_v43 = vunpack.i.l.bf16 %v2280_v41  ;;  %1929 = vmatpush3.msra.mxu1 %v790_v37  ;;  %2009 = vmatpush3.msra.mxu0 %v1038_v38 }
  0xfd   : > { %1930 = vmatprep.subr.mxu1 %v789_v39  ;;  %2010 = vmatprep.subr.mxu0 %v1037_v40 }
  0xfe   : > { %1874 = vmatmul.mubr.f32.gmra.mxu0 %v2863_v42  ;;  %1898 = vmatmul.mubr.f32.gmra.mxu1 %v2865_v43 }
  0xff   : > { %v2285_v46 = vpop.trf.xlu0  ;;  %1931 = vmatpush3.msra.mxu1 %v789_v39  ;;  %2011 = vmatpush3.msra.mxu0 %v1037_v40 }
 0x100   : > { %v2869_v47 = vunpack.i.h.bf16 %v2285_v46  ;;  %v2871_v48 = vunpack.i.l.bf16 %v2285_v46  ;;  %1932 = vmatprep.subr.mxu1 %v788_v44  ;;  %2012 = vmatprep.subr.mxu0 %v1036_v45 }
 0x101   : > { %1933 = vmatpush3.msra.mxu1 %v788_v44  ;;  %2013 = vmatpush3.msra.mxu0 %v1036_v45 }
 0x102   : > { %1876 = vmatprep.mubr.f32.mxu0 %v2869_v47  ;;  %1900 = vmatprep.mubr.f32.mxu1 %v2871_v48 }
 0x103   : > { %v2290_v53 = vpop.trf.xlu0  ;;  %1934 = vmatprep.subr.mxu1 %v787_v49  ;;  %2014 = vmatprep.subr.mxu0 %v1035_v50 }
 0x104   : > { %v2875_v54 = vunpack.i.h.bf16 %v2290_v53  ;;  %v2877_v55 = vunpack.i.l.bf16 %v2290_v53  ;;  %1935 = vmatpush3.msra.mxu1 %v787_v49  ;;  %2015 = vmatpush3.msra.mxu0 %v1035_v50 }
 0x105   : > { %1936 = vmatprep.subr.mxu1 %v786_v51  ;;  %2016 = vmatprep.subr.mxu0 %v1034_v52 }
 0x106   : > { %1877 = vmatmul.mubr.f32.gmra.mxu0 %v2875_v54  ;;  %1901 = vmatmul.mubr.f32.gmra.mxu1 %v2877_v55 }
 0x107   : > { %v2295_v58 = vpop.trf.xlu0  ;;  %1937 = vmatpush3.msra.mxu1 %v786_v51  ;;  %2017 = vmatpush3.msra.mxu0 %v1034_v52 }
 0x108   : > { %v2881_v59 = vunpack.i.h.bf16 %v2295_v58  ;;  %v2883_v60 = vunpack.i.l.bf16 %v2295_v58  ;;  %1938 = vmatprep.subr.mxu1 %v785_v56  ;;  %2018 = vmatprep.subr.mxu0 %v1033_v57 }
 0x109   : > { %1939 = vmatpush3.msra.mxu1 %v785_v56  ;;  %2019 = vmatpush3.msra.mxu0 %v1033_v57 }
 0x10a   : > { %1879 = vmatprep.mubr.f32.mxu0 %v2881_v59  ;;  %1903 = vmatprep.mubr.f32.mxu1 %v2883_v60 }
 0x10b   : > { %v2300_v1 = vpop.trf.xlu0  ;;  %1940 = vmatprep.subr.mxu1 %v784_v61  ;;  %2020 = vmatprep.subr.mxu0 %v1032_v62 }
 0x10c   : > { %v2304_v2 = vunpack.i.h.bf16 %v2300_v1  ;;  %v2887_v5 = vunpack.i.l.bf16 %v2300_v1  ;;  %1941 = vmatpush3.msra.mxu1 %v784_v61  ;;  %2021 = vmatpush3.msra.mxu0 %v1032_v62 }
 0x10d   : > { %1942 = vmatprep.subr.mxu1 %v783_v63  ;;  %2022 = vmatprep.subr.mxu0 %v1031_v0 }
 0x10e   : > { %1880 = vmatmul.mubr.f32.gmra.mxu0 %v2304_v2  ;;  %1904 = vmatmul.mubr.f32.gmra.mxu1 %v2887_v5 }
 0x10f   : > { %v2305_v8 = vpop.trf.xlu0  ;;  %1943 = vmatpush3.msra.mxu1 %v783_v63  ;;  %2023 = vmatpush3.msra.mxu0 %v1031_v0 }
 0x110   : > { %v2309_v9 = vunpack.i.h.bf16 %v2305_v8  ;;  %v2890_v10 = vunpack.i.l.bf16 %v2305_v8 }
 0x112   : > { %1882 = vmatprep.mubr.f32.mxu0 %v2309_v9  ;;  %1906 = vmatprep.mubr.f32.mxu1 %v2890_v10 }
 0x113   : > { %v2310_v13 = vpop.trf.xlu0 }
 0x114   : > { %v2314_v14 = vunpack.i.h.bf16 %v2310_v13  ;;  %v2893_v15 = vunpack.i.l.bf16 %v2310_v13 }
 0x116   : > { %1883 = vmatmul.mubr.f32.gmra.mxu0 %v2314_v14  ;;  %1907 = vmatmul.mubr.f32.gmra.mxu1 %v2893_v15 }
 0x117   : > { %v2315_v16 = vpop.trf.xlu0 }
 0x118   : > { %v2319_v17 = vunpack.i.h.bf16 %v2315_v16  ;;  %v2896_v20 = vunpack.i.l.bf16 %v2315_v16 }
 0x11a   : > { %1885 = vmatprep.mubr.f32.mxu0 %v2319_v17  ;;  %1909 = vmatprep.mubr.f32.mxu1 %v2896_v20 }
 0x11b   : > { %v2320_v21 = vpop.trf.xlu0 }
 0x11c   : > { %v2324_v22 = vunpack.i.h.bf16 %v2320_v21  ;;  %v2899_v25 = vunpack.i.l.bf16 %v2320_v21 }
 0x11e   : > { %1886 = vmatmul.mubr.f32.gmra.mxu0 %v2324_v22  ;;  %1910 = vmatmul.mubr.f32.gmra.mxu1 %v2899_v25 }
 0x11f   : > { %1944 = vmatprep.mubr.f32.mxu1 %v2821_v3  ;;  %2024 = vmatprep.mubr.f32.mxu0 %v2821_v3  ;;  %v2959_v3 = vld [vmem:[%s3308_s4] ss:$0 sm:$0xff] }
 0x122   : > { %1945 = vmatmul.mubr.f32.vlgmr.msra.gmra.mxu1 %v2827_v6  ;;  %2025 = vmatmul.mubr.f32.vlgmr.msra.gmra.mxu0 %v2827_v6 }
 0x123   : > { %1947 = vmatprep.mubr.f32.mxu1 %v2833_v11  ;;  %2027 = vmatprep.mubr.f32.mxu0 %v2833_v11 }
 0x126   : > { %1948 = vmatmul.mubr.f32.gmra.mxu1 %v2839_v18  ;;  %2028 = vmatmul.mubr.f32.gmra.mxu0 %v2839_v18 }
 0x127   : > { %1950 = vmatprep.mubr.f32.mxu1 %v2845_v23  ;;  %2030 = vmatprep.mubr.f32.mxu0 %v2845_v23 }
 0x12a   : > { %1951 = vmatmul.mubr.f32.gmra.mxu1 %v2851_v30  ;;  %2031 = vmatmul.mubr.f32.gmra.mxu0 %v2851_v30 }
 0x12b   : > { %1953 = vmatprep.mubr.f32.mxu1 %v2857_v35  ;;  %2033 = vmatprep.mubr.f32.mxu0 %v2857_v35 }
 0x12e   : > { %1954 = vmatmul.mubr.f32.gmra.mxu1 %v2863_v42  ;;  %2034 = vmatmul.mubr.f32.gmra.mxu0 %v2863_v42 }
 0x12f   : > { %1956 = vmatprep.mubr.f32.mxu1 %v2869_v47  ;;  %2036 = vmatprep.mubr.f32.mxu0 %v2869_v47 }
 0x132   : > { %1957 = vmatmul.mubr.f32.gmra.mxu1 %v2875_v54  ;;  %2037 = vmatmul.mubr.f32.gmra.mxu0 %v2875_v54 }
 0x133   : > { %1959 = vmatprep.mubr.f32.mxu1 %v2881_v59  ;;  %2039 = vmatprep.mubr.f32.mxu0 %v2881_v59 }
 0x136   : > { %1960 = vmatmul.mubr.f32.gmra.mxu1 %v2304_v2  ;;  %2040 = vmatmul.mubr.f32.gmra.mxu0 %v2304_v2 }
 0x137   : > { %1962 = vmatprep.mubr.f32.mxu1 %v2309_v9  ;;  %2042 = vmatprep.mubr.f32.mxu0 %v2309_v9 }
 0x13a   : > { %1963 = vmatmul.mubr.f32.gmra.mxu1 %v2314_v14  ;;  %2043 = vmatmul.mubr.f32.gmra.mxu0 %v2314_v14 }
 0x13b   : > { %1965 = vmatprep.mubr.f32.mxu1 %v2319_v17  ;;  %2045 = vmatprep.mubr.f32.mxu0 %v2319_v17 }
 0x13e   : > { %1966 = vmatmul.mubr.f32.gmra.mxu1 %v2324_v22  ;;  %2046 = vmatmul.mubr.f32.gmra.mxu0 %v2324_v22 }
 0x13f   : > { %1968 = vmatprep.mubr.f32.mxu1 %v2823_v4  ;;  %2048 = vmatprep.mubr.f32.mxu0 %v2823_v4 }
 0x142   : > { %1969 = vmatmul.mubr.f32.gmra.mxu1 %v2829_v7  ;;  %2049 = vmatmul.mubr.f32.gmra.mxu0 %v2829_v7 }
 0x143   : > { %1971 = vmatprep.mubr.f32.mxu1 %v2835_v12  ;;  %2051 = vmatprep.mubr.f32.mxu0 %v2835_v12 }
 0x146   : > { %1972 = vmatmul.mubr.f32.gmra.mxu1 %v2841_v19  ;;  %2052 = vmatmul.mubr.f32.gmra.mxu0 %v2841_v19 }
 0x147   : > { %1974 = vmatprep.mubr.f32.mxu1 %v2847_v24  ;;  %2054 = vmatprep.mubr.f32.mxu0 %v2847_v24 }
 0x14a   : > { %1975 = vmatmul.mubr.f32.gmra.mxu1 %v2853_v31  ;;  %2055 = vmatmul.mubr.f32.gmra.mxu0 %v2853_v31 }
 0x14b   : > { %1977 = vmatprep.mubr.f32.mxu1 %v2859_v36  ;;  %2057 = vmatprep.mubr.f32.mxu0 %v2859_v36 }
 0x14e   : > { %1978 = vmatmul.mubr.f32.gmra.mxu1 %v2865_v43  ;;  %2058 = vmatmul.mubr.f32.gmra.mxu0 %v2865_v43 }
 0x14f   : > { %1980 = vmatprep.mubr.f32.mxu1 %v2871_v48  ;;  %2060 = vmatprep.mubr.f32.mxu0 %v2871_v48 }
 0x152   : > { %1981 = vmatmul.mubr.f32.gmra.mxu1 %v2877_v55  ;;  %2061 = vmatmul.mubr.f32.gmra.mxu0 %v2877_v55 }
 0x153   : > { %1983 = vmatprep.mubr.f32.mxu1 %v2883_v60  ;;  %2063 = vmatprep.mubr.f32.mxu0 %v2883_v60 }
 0x156   : > { %1984 = vmatmul.mubr.f32.gmra.mxu1 %v2887_v5  ;;  %2064 = vmatmul.mubr.f32.gmra.mxu0 %v2887_v5 }
 0x157   : > { %1986 = vmatprep.mubr.f32.mxu1 %v2890_v10  ;;  %2066 = vmatprep.mubr.f32.mxu0 %v2890_v10 }
 0x15a   : > { %1987 = vmatmul.mubr.f32.gmra.mxu1 %v2893_v15  ;;  %2067 = vmatmul.mubr.f32.gmra.mxu0 %v2893_v15 }
 0x15b   : > { %1989 = vmatprep.mubr.f32.mxu1 %v2896_v20  ;;  %2069 = vmatprep.mubr.f32.mxu0 %v2896_v20 }
 0x15e   : > { %1990 = vmatmul.mubr.f32.gmra.mxu1 %v2899_v25  ;;  %2070 = vmatmul.mubr.f32.gmra.mxu0 %v2899_v25 }
 0x1a6   : > { %v1866_v4 = vpop.f32.mrf.mxu0  ;;  %v1890_v6 = vpop.f32.mrf.mxu1 }
 0x1a7   : > { %v630_v7 = vadd.f32 %v1866_v4, %v2959_v3  ;;  %v710_v11 = vadd.f32 %v1890_v6, %v2959_v3 }
 0x1a8   : > { %v624_v12 = vpop.f32.mrf.mxu0  ;;  %v704_v18 = vpop.f32.mrf.mxu1 }
 0x1a9   : > { %v1280_v19 = vmul.f32 0.088388346, %v630_v7  ;;  %v1296_v23 = vmul.f32 0.088388346, %v710_v11  ;;  %v625_v24 = vadd.f32 %v2959_v3, %v624_v12  ;;  %v705_v26 = vadd.f32 %v2959_v3, %v704_v18 }
 0x1ab   : > { %1312 = vst [vmem:[%s2966_s17 + $0x8] sm:$0xff] %v1280_v19  ;;  %1328 = vst [vmem:[%s2966_s17 + $0x88] sm:$0xff] %v1296_v23  ;;  %v1279_v27 = vmul.f32 0.088388346, %v625_v24  ;;  %v1295_v28 = vmul.f32 0.088388346, %v705_v26 }
 0x1ad   : > { %1311 = vst [vmem:[%s2966_s17] sm:$0xff] %v1279_v27  ;;  %1327 = vst [vmem:[%s2966_s17 + $0x80] sm:$0xff] %v1295_v28 }
 0x1ae   : > { %v1869_v29 = vpop.f32.mrf.mxu0  ;;  %v1893_v30 = vpop.f32.mrf.mxu1 }
 0x1af   : > { %v640_v31 = vadd.f32 %v1869_v29, %v2959_v3  ;;  %v720_v32 = vadd.f32 %v1893_v30, %v2959_v3 }
 0x1b0   : > { %v634_v33 = vpop.f32.mrf.mxu0  ;;  %v714_v34 = vpop.f32.mrf.mxu1 }
 0x1b1   : > { %v1282_v35 = vmul.f32 0.088388346, %v640_v31  ;;  %v1298_v36 = vmul.f32 0.088388346, %v720_v32  ;;  %v635_v37 = vadd.f32 %v2959_v3, %v634_v33  ;;  %v715_v38 = vadd.f32 %v2959_v3, %v714_v34 }
 0x1b3   : > { %1314 = vst [vmem:[%s2966_s17 + $0x18] sm:$0xff] %v1282_v35  ;;  %1330 = vst [vmem:[%s2966_s17 + $0x98] sm:$0xff] %v1298_v36  ;;  %v1281_v39 = vmul.f32 0.088388346, %v635_v37  ;;  %v1297_v40 = vmul.f32 0.088388346, %v715_v38 }
 0x1b5   : > { %1313 = vst [vmem:[%s2966_s17 + $0x10] sm:$0xff] %v1281_v39  ;;  %1329 = vst [vmem:[%s2966_s17 + $0x90] sm:$0xff] %v1297_v40 }
 0x1b6   : > { %v1872_v41 = vpop.f32.mrf.mxu0  ;;  %v1896_v42 = vpop.f32.mrf.mxu1 }
 0x1b7   : > { %v650_v43 = vadd.f32 %v1872_v41, %v2959_v3  ;;  %v730_v44 = vadd.f32 %v1896_v42, %v2959_v3 }
 0x1b8   : > { %v644_v45 = vpop.f32.mrf.mxu0  ;;  %v724_v46 = vpop.f32.mrf.mxu1 }
 0x1b9   : > { %v1284_v47 = vmul.f32 0.088388346, %v650_v43  ;;  %v1300_v48 = vmul.f32 0.088388346, %v730_v44  ;;  %v645_v49 = vadd.f32 %v2959_v3, %v644_v45  ;;  %v725_v50 = vadd.f32 %v2959_v3, %v724_v46  ;;  %v3025_v44 = vld [vmem:[%s3309_s5] ss:$0 sm:$0xff] }
 0x1ba   : > { %v3030_v45 = vld [vmem:[%s3310_s6] ss:$0 sm:$0xff] }
 0x1bb   : > { %1316 = vst [vmem:[%s2966_s17 + $0x28] sm:$0xff] %v1284_v47  ;;  %1332 = vst [vmem:[%s2966_s17 + $0xa8] sm:$0xff] %v1300_v48  ;;  %v1283_v51 = vmul.f32 0.088388346, %v645_v49  ;;  %v1299_v52 = vmul.f32 0.088388346, %v725_v50 }
 0x1bd   : > { %1315 = vst [vmem:[%s2966_s17 + $0x20] sm:$0xff] %v1283_v51  ;;  %1331 = vst [vmem:[%s2966_s17 + $0xa0] sm:$0xff] %v1299_v52 }
 0x1be   : > { %v1875_v53 = vpop.f32.mrf.mxu0  ;;  %v1899_v54 = vpop.f32.mrf.mxu1 }
 0x1bf   : > { %v660_v55 = vadd.f32 %v1875_v53, %v2959_v3  ;;  %v740_v56 = vadd.f32 %v1899_v54, %v2959_v3 }
 0x1c0   : > { %v654_v57 = vpop.f32.mrf.mxu0  ;;  %v734_v58 = vpop.f32.mrf.mxu1 }
 0x1c1   : > { %v1286_v59 = vmul.f32 0.088388346, %v660_v55  ;;  %v1302_v60 = vmul.f32 0.088388346, %v740_v56  ;;  %v655_v61 = vadd.f32 %v2959_v3, %v654_v57  ;;  %v735_v62 = vadd.f32 %v2959_v3, %v734_v58 }
 0x1c3   : > { %1318 = vst [vmem:[%s2966_s17 + $0x38] sm:$0xff] %v1286_v59  ;;  %1334 = vst [vmem:[%s2966_s17 + $0xb8] sm:$0xff] %v1302_v60  ;;  %v1285_v63 = vmul.f32 0.088388346, %v655_v61  ;;  %v1301_v0 = vmul.f32 0.088388346, %v735_v62 }
 0x1c5   : > { %1317 = vst [vmem:[%s2966_s17 + $0x30] sm:$0xff] %v1285_v63  ;;  %1333 = vst [vmem:[%s2966_s17 + $0xb0] sm:$0xff] %v1301_v0 }
 0x1c6   : > { %v1878_v1 = vpop.f32.mrf.mxu0  ;;  %v1902_v2 = vpop.f32.mrf.mxu1 }
 0x1c7   : > { %v670_v5 = vadd.f32 %v1878_v1, %v2959_v3  ;;  %v750_v8 = vadd.f32 %v1902_v2, %v2959_v3 }
 0x1c8   : > { %v664_v9 = vpop.f32.mrf.mxu0  ;;  %v744_v10 = vpop.f32.mrf.mxu1 }
 0x1c9   : > { %v1288_v13 = vmul.f32 0.088388346, %v670_v5  ;;  %v1304_v14 = vmul.f32 0.088388346, %v750_v8  ;;  %v665_v15 = vadd.f32 %v2959_v3, %v664_v9  ;;  %v745_v16 = vadd.f32 %v2959_v3, %v744_v10 }
 0x1cb   : > { %1320 = vst [vmem:[%s2966_s17 + $0x48] sm:$0xff] %v1288_v13  ;;  %1336 = vst [vmem:[%s2966_s17 + $0xc8] sm:$0xff] %v1304_v14  ;;  %v1287_v17 = vmul.f32 0.088388346, %v665_v15  ;;  %v1303_v20 = vmul.f32 0.088388346, %v745_v16 }
 0x1cd   : > { %1319 = vst [vmem:[%s2966_s17 + $0x40] sm:$0xff] %v1287_v17  ;;  %1335 = vst [vmem:[%s2966_s17 + $0xc0] sm:$0xff] %v1303_v20 }
 0x1ce   : > { %v1881_v21 = vpop.f32.mrf.mxu0  ;;  %v1905_v22 = vpop.f32.mrf.mxu1 }
 0x1cf   : > { %v680_v25 = vadd.f32 %v1881_v21, %v2959_v3  ;;  %v760_v4 = vadd.f32 %v1905_v22, %v2959_v3 }
 0x1d0   : > { %v674_v6 = vpop.f32.mrf.mxu0  ;;  %v754_v7 = vpop.f32.mrf.mxu1 }
 0x1d1   : > { %v1290_v11 = vmul.f32 0.088388346, %v680_v25  ;;  %v1306_v12 = vmul.f32 0.088388346, %v760_v4  ;;  %v675_v18 = vadd.f32 %v2959_v3, %v674_v6  ;;  %v755_v19 = vadd.f32 %v2959_v3, %v754_v7 }
 0x1d3   : > { %1322 = vst [vmem:[%s2966_s17 + $0x58] sm:$0xff] %v1290_v11  ;;  %1338 = vst [vmem:[%s2966_s17 + $0xd8] sm:$0xff] %v1306_v12  ;;  %v1289_v23 = vmul.f32 0.088388346, %v675_v18  ;;  %v1305_v24 = vmul.f32 0.088388346, %v755_v19 }
 0x1d5   : > { %1321 = vst [vmem:[%s2966_s17 + $0x50] sm:$0xff] %v1289_v23  ;;  %1337 = vst [vmem:[%s2966_s17 + $0xd0] sm:$0xff] %v1305_v24 }
 0x1d6   : > { %v1884_v26 = vpop.f32.mrf.mxu0  ;;  %v1908_v27 = vpop.f32.mrf.mxu1 }
 0x1d7   : > { %v690_v28 = vadd.f32 %v1884_v26, %v2959_v3  ;;  %v770_v29 = vadd.f32 %v1908_v27, %v2959_v3 }
 0x1d8   : > { %v684_v30 = vpop.f32.mrf.mxu0  ;;  %v764_v31 = vpop.f32.mrf.mxu1 }
 0x1d9   : > { %v1292_v32 = vmul.f32 0.088388346, %v690_v28  ;;  %v1308_v33 = vmul.f32 0.088388346, %v770_v29  ;;  %v685_v34 = vadd.f32 %v2959_v3, %v684_v30  ;;  %v765_v35 = vadd.f32 %v2959_v3, %v764_v31 }
 0x1db   : > { %1324 = vst [vmem:[%s2966_s17 + $0x68] sm:$0xff] %v1292_v32  ;;  %1340 = vst [vmem:[%s2966_s17 + $0xe8] sm:$0xff] %v1308_v33  ;;  %v1291_v36 = vmul.f32 0.088388346, %v685_v34  ;;  %v1307_v37 = vmul.f32 0.088388346, %v765_v35 }
 0x1dd   : > { %1323 = vst [vmem:[%s2966_s17 + $0x60] sm:$0xff] %v1291_v36  ;;  %1339 = vst [vmem:[%s2966_s17 + $0xe0] sm:$0xff] %v1307_v37 }
 0x1de   : > { %v1887_v38 = vpop.f32.mrf.mxu0  ;;  %v1911_v39 = vpop.f32.mrf.mxu1 }
 0x1df   : > { %v700_v40 = vadd.f32 %v1887_v38, %v2959_v3  ;;  %v780_v41 = vadd.f32 %v1911_v39, %v2959_v3 }
 0x1e0   : > { %v694_v42 = vpop.f32.mrf.mxu0  ;;  %v774_v43 = vpop.f32.mrf.mxu1 }
 0x1e1   : > { %v1294_v46 = vmul.f32 0.088388346, %v700_v40  ;;  %v1310_v47 = vmul.f32 0.088388346, %v780_v41  ;;  %v695_v48 = vadd.f32 %v2959_v3, %v694_v42  ;;  %v775_v49 = vadd.f32 %v2959_v3, %v774_v43 }
 0x1e2   : > { %v1946_v50 = vpop.f32.mrf.mxu1  ;;  %v2026_v51 = vpop.f32.mrf.mxu0 }
 0x1e3   : > { %1326 = vst [vmem:[%s2966_s17 + $0x78] sm:$0xff] %v1294_v46  ;;  %1342 = vst [vmem:[%s2966_s17 + $0xf8] sm:$0xff] %v1310_v47  ;;  %v1293_v52 = vmul.f32 0.088388346, %v695_v48  ;;  %v1309_v53 = vmul.f32 0.088388346, %v775_v49  ;;  %v878_v54 = vadd.f32 %v1946_v50, %v3025_v44  ;;  %v1126_v55 = vadd.f32 %v2026_v51, %v3030_v45 }
 0x1e4   : > { %v872_v3 = vpop.f32.mrf.mxu1  ;;  %v1120_v56 = vpop.f32.mrf.mxu0 }
 0x1e5   : > { %1325 = vst [vmem:[%s2966_s17 + $0x70] sm:$0xff] %v1293_v52  ;;  %1341 = vst [vmem:[%s2966_s17 + $0xf0] sm:$0xff] %v1309_v53  ;;  %v873_v57 = vadd.f32 %v3025_v44, %v872_v3  ;;  %v1121_v58 = vadd.f32 %v3030_v45, %v1120_v56  ;;  %s2585_s17 = smov [#allocation10]  }
 0x1e6   : > { %1344 = vst [vmem:[%s3053_s24 + $0x8] sm:$0xff] %v878_v54  ;;  %1376 = vst [vmem:[%s3057_s20 + $0x8] sm:$0xff] %v1126_v55  ;;  %v1949_v59 = vpop.f32.mrf.mxu1  ;;  %v2029_v60 = vpop.f32.mrf.mxu0  ;;  %s2435_s18 = sshll.u32 %s2585_s17, 4  ;;  %s2436_s18 = int_to_ptr.vmem [resolvable:$false] %s2435_s18 }
 0x1e7   : > { %s2437_s19 = scalar_lea.vmem %s2436_s18, 8192  ;;  %p2438_p2 = scmp.lt.s32.totalorder %s3048_s28, %s2436_s18 }
 0x1e8   : > { %p2439_p4 = scmp.lt.s32.totalorder %s2437_s19, %s2431_s3 }
 0x1ea   : > { %p2440_p6 = por %p2439_p4, %p2438_p2 }
 0x1ec   : > { %p2441_p12 = pnand %p2440_p6, %p2434_p13 }
 0x1ee   : > { %2444 = shalt.err (!%p2441_p12)
}
 0x1ef   : > { %s2445_s21 = scalar_lea.hbm %s3046_s26, 4096  ;;  %s2449_s12 = scalar_lea.hbm %s3311_s7, 8192 }
 0x1f0   : > { %p2446_p0 = scmp.ne.s32.totalorder %s3046_s26, %s2445_s21  ;;  %p2450_p8 = scmp.lt.s32.totalorder %s3046_s26, %s3311_s7 }
 0x1f1   : > { %p2451_p7 = scmp.lt.s32.totalorder %s2449_s12, %s2445_s21 }
 0x1f2   : > { %p2447_p3 = pnand %p2446_p0, %p2738_p5 }
 0x1f3   : > { %p2452_p11 = por %p2451_p7, %p2450_p8 }
 0x1f4   : > { %p2448_p10 = pneg %p2447_p3 }
 0x1f6   : > { %p2453_p1 = pnand %p2452_p11, %p2448_p10 }
 0x1f8   : > { %2456 = shalt.err (!%p2453_p1)
}
 0x1f9   : > { %s2586_s3 = smov 128   ;;  %s2587_s18 = smov 8   ;;  %1343 = vst [vmem:[%s3053_s24] sm:$0xff] %v873_v57  ;;  %1375 = vst [vmem:[%s3057_s20] sm:$0xff] %v1121_v58  ;;  %v888_v61 = vadd.f32 %v1949_v59, %v3025_v44  ;;  %v1136_v62 = vadd.f32 %v2029_v60, %v3030_v45  ;;  %v882_v63 = vpop.f32.mrf.mxu1  ;;  %v1130_v0 = vpop.f32.mrf.mxu0 }
 0x1fa   : > { %2118 = dma.vmem_to_hbm [thread:$0]  (%p2738_p5), %s3048_s28, 4096, %s3046_s26, %s1408_s2, %s2586_s3, %s2586_s3, %s2587_s18   ;;  %v883_v1 = vadd.f32 %v3025_v44, %v882_v63  ;;  %v1131_v2 = vadd.f32 %v3030_v45, %v1130_v0 }
 0x1fb   : > { %1346 = vst [vmem:[%s3053_s24 + $0x18] sm:$0xff] %v888_v61  ;;  %1378 = vst [vmem:[%s3057_s20 + $0x18] sm:$0xff] %v1136_v62  ;;  %v1952_v5 = vpop.f32.mrf.mxu1  ;;  %v2032_v8 = vpop.f32.mrf.mxu0  ;;  %s1412_s25 = sand.u32 1, %s2671_s15   ;;  %s1451_s28 = sshll.u32 %s3053_s24, 4  ;;  %s3217_s28 = int_to_ptr.vmem [resolvable:$true] %s1451_s28 }
 0x1fc   : > { %1345 = vst [vmem:[%s3053_s24 + $0x10] sm:$0xff] %v883_v1  ;;  %1377 = vst [vmem:[%s3057_s20 + $0x10] sm:$0xff] %v1131_v2  ;;  %v898_v9 = vadd.f32 %v1952_v5, %v3025_v44  ;;  %v1146_v10 = vadd.f32 %v2032_v8, %v3030_v45  ;;  %s1469_s26 = sshll.u32 %s3057_s20, 4  ;;  %s3215_s19 = scalar_lea.hbm %s3312_s8, %s3033_s16  ;;  %s3225_s26 = int_to_ptr.vmem [resolvable:$true] %s1469_s26 }
 0x1fd   : > { %v892_v13 = vpop.f32.mrf.mxu1  ;;  %v1140_v14 = vpop.f32.mrf.mxu0  ;;  %s3223_s27 = scalar_lea.hbm %s3313_s9, %s3033_s16  ;;  %s3229_s12 = scalar_lea.sflag [#allocation12], %s1412_s25 }
 0x1fe   : > { %1348 = vst [vmem:[%s3053_s24 + $0x28] sm:$0xff] %v898_v9  ;;  %1380 = vst [vmem:[%s3057_s20 + $0x28] sm:$0xff] %v1146_v10  ;;  %v893_v15 = vadd.f32 %v3025_v44, %v892_v13  ;;  %v1141_v16 = vadd.f32 %v3030_v45, %v1140_v14  ;;  %s2457_s1 = scalar_lea.vmem %s3217_s28, 4096  ;;  %s2588_s17 = smov [#allocation11]  }
 0x1ff   : > { %v1955_v17 = vpop.f32.mrf.mxu1  ;;  %v2035_v20 = vpop.f32.mrf.mxu0  ;;  %p2458_p9 = scmp.ne.s32.totalorder %s3217_s28, %s2457_s1  ;;  %s2461_s15 = sshll.u32 %s2588_s17, 4  ;;  %s2462_s15 = int_to_ptr.vmem [resolvable:$false] %s2461_s15 }
 0x200   : > { %1347 = vst [vmem:[%s3053_s24 + $0x20] sm:$0xff] %v893_v15  ;;  %1379 = vst [vmem:[%s3057_s20 + $0x20] sm:$0xff] %v1141_v16  ;;  %v908_v21 = vadd.f32 %v1955_v17, %v3025_v44  ;;  %v1156_v22 = vadd.f32 %v2035_v20, %v3030_v45  ;;  %s2463_s2 = scalar_lea.vmem %s2462_s15, 8192  ;;  %p2464_p4 = scmp.lt.s32.totalorder %s3217_s28, %s2462_s15 }
 0x201   : > { %v902_v25 = vpop.f32.mrf.mxu1  ;;  %v1150_v4 = vpop.f32.mrf.mxu0  ;;  %p2459_p13 = pnand %p2458_p9, %p2738_p5  ;;  %p2465_p6 = scmp.lt.s32.totalorder %s2463_s2, %s2457_s1 }
 0x202   : > { %1350 = vst [vmem:[%s3053_s24 + $0x38] sm:$0xff] %v908_v21  ;;  %1382 = vst [vmem:[%s3057_s20 + $0x38] sm:$0xff] %v1156_v22  ;;  %v903_v6 = vadd.f32 %v3025_v44, %v902_v25  ;;  %v1151_v7 = vadd.f32 %v3030_v45, %v1150_v4 }
 0x203   : > { %v1958_v11 = vpop.f32.mrf.mxu1  ;;  %v2038_v12 = vpop.f32.mrf.mxu0  ;;  %p2460_p2 = pneg %p2459_p13  ;;  %p2466_p12 = por %p2465_p6, %p2464_p4 }
 0x204   : > { %1349 = vst [vmem:[%s3053_s24 + $0x30] sm:$0xff] %v903_v6  ;;  %1381 = vst [vmem:[%s3057_s20 + $0x30] sm:$0xff] %v1151_v7  ;;  %v918_v18 = vadd.f32 %v1958_v11, %v3025_v44  ;;  %v1166_v19 = vadd.f32 %v2038_v12, %v3030_v45 }
 0x205   : > { %v912_v23 = vpop.f32.mrf.mxu1  ;;  %v1160_v24 = vpop.f32.mrf.mxu0  ;;  %p2467_p0 = pnand %p2466_p12, %p2460_p2 }
 0x206   : > { %1352 = vst [vmem:[%s3053_s24 + $0x48] sm:$0xff] %v918_v18  ;;  %1384 = vst [vmem:[%s3057_s20 + $0x48] sm:$0xff] %v1166_v19  ;;  %v913_v26 = vadd.f32 %v3025_v44, %v912_v23  ;;  %v1161_v27 = vadd.f32 %v3030_v45, %v1160_v24 }
 0x207   : > { %v1961_v28 = vpop.f32.mrf.mxu1  ;;  %v2041_v29 = vpop.f32.mrf.mxu0 }
 0x208   : > { %1351 = vst [vmem:[%s3053_s24 + $0x40] sm:$0xff] %v913_v26  ;;  %1383 = vst [vmem:[%s3057_s20 + $0x40] sm:$0xff] %v1161_v27  ;;  %v928_v30 = vadd.f32 %v1961_v28, %v3025_v44  ;;  %v1176_v31 = vadd.f32 %v2041_v29, %v3030_v45 }
 0x209   : > { %v922_v32 = vpop.f32.mrf.mxu1  ;;  %v1170_v33 = vpop.f32.mrf.mxu0 }
 0x20a   : > { %1354 = vst [vmem:[%s3053_s24 + $0x58] sm:$0xff] %v928_v30  ;;  %1386 = vst [vmem:[%s3057_s20 + $0x58] sm:$0xff] %v1176_v31  ;;  %v923_v34 = vadd.f32 %v3025_v44, %v922_v32  ;;  %v1171_v35 = vadd.f32 %v3030_v45, %v1170_v33 }
 0x20b   : > { %v1964_v36 = vpop.f32.mrf.mxu1  ;;  %v2044_v37 = vpop.f32.mrf.mxu0 }
 0x20c   : > { %1353 = vst [vmem:[%s3053_s24 + $0x50] sm:$0xff] %v923_v34  ;;  %1385 = vst [vmem:[%s3057_s20 + $0x50] sm:$0xff] %v1171_v35  ;;  %v938_v38 = vadd.f32 %v1964_v36, %v3025_v44  ;;  %v1186_v39 = vadd.f32 %v2044_v37, %v3030_v45 }
 0x20d   : > { %v932_v40 = vpop.f32.mrf.mxu1  ;;  %v1180_v41 = vpop.f32.mrf.mxu0 }
 0x20e   : > { %1356 = vst [vmem:[%s3053_s24 + $0x68] sm:$0xff] %v938_v38  ;;  %1388 = vst [vmem:[%s3057_s20 + $0x68] sm:$0xff] %v1186_v39  ;;  %v933_v42 = vadd.f32 %v3025_v44, %v932_v40  ;;  %v1181_v43 = vadd.f32 %v3030_v45, %v1180_v41 }
 0x20f   : > { %v1967_v46 = vpop.f32.mrf.mxu1  ;;  %v2047_v47 = vpop.f32.mrf.mxu0 }
 0x210   : > { %1355 = vst [vmem:[%s3053_s24 + $0x60] sm:$0xff] %v933_v42  ;;  %1387 = vst [vmem:[%s3057_s20 + $0x60] sm:$0xff] %v1181_v43  ;;  %v948_v48 = vadd.f32 %v1967_v46, %v3025_v44  ;;  %v1196_v49 = vadd.f32 %v2047_v47, %v3030_v45 }
 0x211   : > { %v942_v50 = vpop.f32.mrf.mxu1  ;;  %v1190_v51 = vpop.f32.mrf.mxu0 }
 0x212   : > { %1358 = vst [vmem:[%s3053_s24 + $0x78] sm:$0xff] %v948_v48  ;;  %1390 = vst [vmem:[%s3057_s20 + $0x78] sm:$0xff] %v1196_v49  ;;  %v943_v52 = vadd.f32 %v3025_v44, %v942_v50  ;;  %v1191_v53 = vadd.f32 %v3030_v45, %v1190_v51 }
 0x213   : > { %v1970_v54 = vpop.f32.mrf.mxu1  ;;  %v2050_v55 = vpop.f32.mrf.mxu0 }
 0x214   : > { %1357 = vst [vmem:[%s3053_s24 + $0x70] sm:$0xff] %v943_v52  ;;  %1389 = vst [vmem:[%s3057_s20 + $0x70] sm:$0xff] %v1191_v53  ;;  %v958_v3 = vadd.f32 %v1970_v54, %v3025_v44  ;;  %v1206_v56 = vadd.f32 %v2050_v55, %v3030_v45 }
 0x215   : > { %v952_v57 = vpop.f32.mrf.mxu1  ;;  %v1200_v58 = vpop.f32.mrf.mxu0 }
 0x216   : > { %1360 = vst [vmem:[%s3053_s24 + $0x88] sm:$0xff] %v958_v3  ;;  %1392 = vst [vmem:[%s3057_s20 + $0x88] sm:$0xff] %v1206_v56  ;;  %v953_v59 = vadd.f32 %v3025_v44, %v952_v57  ;;  %v1201_v60 = vadd.f32 %v3030_v45, %v1200_v58 }
 0x217   : > { %v1973_v61 = vpop.f32.mrf.mxu1  ;;  %v2053_v62 = vpop.f32.mrf.mxu0 }
 0x218   : > { %1359 = vst [vmem:[%s3053_s24 + $0x80] sm:$0xff] %v953_v59  ;;  %1391 = vst [vmem:[%s3057_s20 + $0x80] sm:$0xff] %v1201_v60  ;;  %v968_v63 = vadd.f32 %v1973_v61, %v3025_v44  ;;  %v1216_v0 = vadd.f32 %v2053_v62, %v3030_v45 }
 0x219   : > { %v962_v1 = vpop.f32.mrf.mxu1  ;;  %v1210_v2 = vpop.f32.mrf.mxu0 }
 0x21a   : > { %1362 = vst [vmem:[%s3053_s24 + $0x98] sm:$0xff] %v968_v63  ;;  %1394 = vst [vmem:[%s3057_s20 + $0x98] sm:$0xff] %v1216_v0  ;;  %v963_v5 = vadd.f32 %v3025_v44, %v962_v1  ;;  %v1211_v8 = vadd.f32 %v3030_v45, %v1210_v2 }
 0x21b   : > { %v1976_v9 = vpop.f32.mrf.mxu1  ;;  %v2056_v10 = vpop.f32.mrf.mxu0 }
 0x21c   : > { %1361 = vst [vmem:[%s3053_s24 + $0x90] sm:$0xff] %v963_v5  ;;  %1393 = vst [vmem:[%s3057_s20 + $0x90] sm:$0xff] %v1211_v8  ;;  %v978_v13 = vadd.f32 %v1976_v9, %v3025_v44  ;;  %v1226_v14 = vadd.f32 %v2056_v10, %v3030_v45 }
 0x21d   : > { %v972_v15 = vpop.f32.mrf.mxu1  ;;  %v1220_v16 = vpop.f32.mrf.mxu0 }
 0x21e   : > { %1364 = vst [vmem:[%s3053_s24 + $0xa8] sm:$0xff] %v978_v13  ;;  %1396 = vst [vmem:[%s3057_s20 + $0xa8] sm:$0xff] %v1226_v14  ;;  %v973_v17 = vadd.f32 %v3025_v44, %v972_v15  ;;  %v1221_v20 = vadd.f32 %v3030_v45, %v1220_v16 }
 0x21f   : > { %v1979_v21 = vpop.f32.mrf.mxu1  ;;  %v2059_v22 = vpop.f32.mrf.mxu0 }
 0x220   : > { %1363 = vst [vmem:[%s3053_s24 + $0xa0] sm:$0xff] %v973_v17  ;;  %1395 = vst [vmem:[%s3057_s20 + $0xa0] sm:$0xff] %v1221_v20  ;;  %v988_v25 = vadd.f32 %v1979_v21, %v3025_v44  ;;  %v1236_v4 = vadd.f32 %v2059_v22, %v3030_v45 }
 0x221   : > { %v982_v6 = vpop.f32.mrf.mxu1  ;;  %v1230_v7 = vpop.f32.mrf.mxu0 }
 0x222   : > { %1366 = vst [vmem:[%s3053_s24 + $0xb8] sm:$0xff] %v988_v25  ;;  %1398 = vst [vmem:[%s3057_s20 + $0xb8] sm:$0xff] %v1236_v4  ;;  %v983_v11 = vadd.f32 %v3025_v44, %v982_v6  ;;  %v1231_v12 = vadd.f32 %v3030_v45, %v1230_v7 }
 0x223   : > { %v1982_v18 = vpop.f32.mrf.mxu1  ;;  %v2062_v19 = vpop.f32.mrf.mxu0 }
 0x224   : > { %1365 = vst [vmem:[%s3053_s24 + $0xb0] sm:$0xff] %v983_v11  ;;  %1397 = vst [vmem:[%s3057_s20 + $0xb0] sm:$0xff] %v1231_v12  ;;  %v998_v23 = vadd.f32 %v1982_v18, %v3025_v44  ;;  %v1246_v24 = vadd.f32 %v2062_v19, %v3030_v45 }
 0x225   : > { %v992_v26 = vpop.f32.mrf.mxu1  ;;  %v1240_v27 = vpop.f32.mrf.mxu0 }
 0x226   : > { %1368 = vst [vmem:[%s3053_s24 + $0xc8] sm:$0xff] %v998_v23  ;;  %1400 = vst [vmem:[%s3057_s20 + $0xc8] sm:$0xff] %v1246_v24  ;;  %v993_v28 = vadd.f32 %v3025_v44, %v992_v26  ;;  %v1241_v29 = vadd.f32 %v3030_v45, %v1240_v27 }
 0x227   : > { %v1985_v30 = vpop.f32.mrf.mxu1  ;;  %v2065_v31 = vpop.f32.mrf.mxu0 }
 0x228   : > { %1367 = vst [vmem:[%s3053_s24 + $0xc0] sm:$0xff] %v993_v28  ;;  %1399 = vst [vmem:[%s3057_s20 + $0xc0] sm:$0xff] %v1241_v29  ;;  %v1008_v32 = vadd.f32 %v1985_v30, %v3025_v44  ;;  %v1256_v33 = vadd.f32 %v2065_v31, %v3030_v45 }
 0x229   : > { %v1002_v34 = vpop.f32.mrf.mxu1  ;;  %v1250_v35 = vpop.f32.mrf.mxu0 }
 0x22a   : > { %1370 = vst [vmem:[%s3053_s24 + $0xd8] sm:$0xff] %v1008_v32  ;;  %1402 = vst [vmem:[%s3057_s20 + $0xd8] sm:$0xff] %v1256_v33  ;;  %v1003_v36 = vadd.f32 %v3025_v44, %v1002_v34  ;;  %v1251_v37 = vadd.f32 %v3030_v45, %v1250_v35 }
 0x22b   : > { %v1988_v38 = vpop.f32.mrf.mxu1  ;;  %v2068_v39 = vpop.f32.mrf.mxu0 }
 0x22c   : > { %1369 = vst [vmem:[%s3053_s24 + $0xd0] sm:$0xff] %v1003_v36  ;;  %1401 = vst [vmem:[%s3057_s20 + $0xd0] sm:$0xff] %v1251_v37  ;;  %v1018_v40 = vadd.f32 %v1988_v38, %v3025_v44  ;;  %v1266_v41 = vadd.f32 %v2068_v39, %v3030_v45 }
 0x22d   : > { %v1012_v42 = vpop.f32.mrf.mxu1  ;;  %v1260_v43 = vpop.f32.mrf.mxu0 }
 0x22e   : > { %1372 = vst [vmem:[%s3053_s24 + $0xe8] sm:$0xff] %v1018_v40  ;;  %1404 = vst [vmem:[%s3057_s20 + $0xe8] sm:$0xff] %v1266_v41  ;;  %v1013_v46 = vadd.f32 %v3025_v44, %v1012_v42  ;;  %v1261_v47 = vadd.f32 %v3030_v45, %v1260_v43 }
 0x22f   : > { %v1991_v48 = vpop.f32.mrf.mxu1  ;;  %v2071_v49 = vpop.f32.mrf.mxu0 }
 0x230   : > { %1371 = vst [vmem:[%s3053_s24 + $0xe0] sm:$0xff] %v1013_v46  ;;  %1403 = vst [vmem:[%s3057_s20 + $0xe0] sm:$0xff] %v1261_v47  ;;  %v1028_v50 = vadd.f32 %v1991_v48, %v3025_v44  ;;  %v1276_v51 = vadd.f32 %v2071_v49, %v3030_v45 }
 0x231   : > { %v1022_v52 = vpop.f32.mrf.mxu1  ;;  %v1270_v53 = vpop.f32.mrf.mxu0 }
 0x232   : > { %1374 = vst [vmem:[%s3053_s24 + $0xf8] sm:$0xff] %v1028_v50  ;;  %1406 = vst [vmem:[%s3057_s20 + $0xf8] sm:$0xff] %v1276_v51  ;;  %v1023_v54 = vadd.f32 %v3025_v44, %v1022_v52  ;;  %v1271_v55 = vadd.f32 %v3030_v45, %v1270_v53 }
 0x234   : > { %1373 = vst [vmem:[%s3053_s24 + $0xf0] sm:$0xff] %v1023_v54  ;;  %1405 = vst [vmem:[%s3057_s20 + $0xf0] sm:$0xff] %v1271_v55 }
 0x235   : > { %2470 = shalt.err (!%p2467_p0)
}
 0x236   : > { %s2471_s16 = scalar_lea.hbm %s3215_s19, 4096  ;;  %s2475_s25 = scalar_lea.hbm %s3312_s8, 8192 }
 0x237   : > { %p2472_p3 = scmp.ne.s32.totalorder %s3215_s19, %s2471_s16  ;;  %p2476_p7 = scmp.lt.s32.totalorder %s3215_s19, %s3312_s8 }
 0x238   : > { %p2477_p11 = scmp.lt.s32.totalorder %s2475_s25, %s2471_s16 }
 0x239   : > { %p2473_p10 = pnand %p2472_p3, %p2738_p5 }
 0x23a   : > { %p2478_p1 = por %p2477_p11, %p2476_p7 }
 0x23b   : > { %p2474_p8 = pneg %p2473_p10 }
 0x23d   : > { %p2479_p9 = pnand %p2478_p1, %p2474_p8 }
 0x23f   : > { %2482 = shalt.err (!%p2479_p9)
}
 0x240   : > { %2119 = dma.vmem_to_hbm [thread:$0]  (%p2738_p5), %s3217_s28, 4096, %s3215_s19, %s3229_s12, %s2586_s3, %s2586_s3, %s2587_s18  }
 0x241   : > { %s2483_s1 = scalar_lea.vmem %s3225_s26, 4096  ;;  %s2589_s17 = smov [#allocation13]  }
 0x242   : > { %p2484_p13 = scmp.ne.s32.totalorder %s3225_s26, %s2483_s1  ;;  %s2487_s15 = sshll.u32 %s2589_s17, 4  ;;  %s2488_s15 = int_to_ptr.vmem [resolvable:$false] %s2487_s15 }
 0x243   : > { %s2489_s2 = scalar_lea.vmem %s2488_s15, 8192  ;;  %p2490_p6 = scmp.lt.s32.totalorder %s3225_s26, %s2488_s15 }
 0x244   : > { %p2485_p2 = pnand %p2484_p13, %p2738_p5  ;;  %p2491_p12 = scmp.lt.s32.totalorder %s2489_s2, %s2483_s1 }
 0x246   : > { %p2486_p4 = pneg %p2485_p2  ;;  %p2492_p0 = por %p2491_p12, %p2490_p6 }
 0x248   : > { %p2493_p3 = pnand %p2492_p0, %p2486_p4 }
 0x24a   : > { %2496 = shalt.err (!%p2493_p3)
}
 0x24b   : > { %s2497_s16 = scalar_lea.hbm %s3223_s27, 4096  ;;  %s2501_s24 = scalar_lea.hbm %s3313_s9, 8192 }
 0x24c   : > { %p2498_p10 = scmp.ne.s32.totalorder %s3223_s27, %s2497_s16  ;;  %p2502_p11 = scmp.lt.s32.totalorder %s3223_s27, %s3313_s9 }
 0x24d   : > { %p2503_p1 = scmp.lt.s32.totalorder %s2501_s24, %s2497_s16 }
 0x24e   : > { %p2499_p8 = pnand %p2498_p10, %p2738_p5 }
 0x24f   : > { %p2504_p9 = por %p2503_p1, %p2502_p11 }
 0x250   : > { %p2500_p7 = pneg %p2499_p8 }
 0x252   : > { %p2505_p13 = pnand %p2504_p9, %p2500_p7 }
 0x254   : > { %2508 = shalt.err (!%p2505_p13)
}
 0x255   : > { %2120 = dma.vmem_to_hbm [thread:$0]  (%p2738_p5), %s3225_s26, 4096, %s3223_s27, %s3229_s12, %s2586_s3, %s2586_s3, %s2587_s18  }
 0x256 PF: > { %s3339_s21 = sld [smem:[#allocation19_spill]]  ;;  %s1484_s23 = sand.u32 1, %s2555_s30  }
 0x257   : > { %p3341_p4 = scmp.ge.s32.totalorder %s2575_s14, 2  ;;  %s1485_s1 = scalar_lea.sflag [#allocation4], %s1484_s23 }
 0x25c   : > { %p3340_p2 = scmp.ne.s32.totalorder %s3339_s21, 0 }
 0x25e   : > { %p2139_p6 = pnand %p3341_p4, %p3340_p2 }
 0x260   : > { %p2140_p12 = pneg %p2139_p6 }
 0x262   : > { %2546 = dma.done.wait (%p2140_p12), %s1485_s1, 4096  }
 0x263   : > { %2548 = vsyncadd (%p2140_p12), %s1485_s1, 4294963200  ;;  %s3342_s22 = sadd.s32 4294967294, %s2575_s14  }
 0x264   : > { %s1493_s17 = sand.u32 1, %s3342_s22  }
 0x265   : > { %s1494_s15 = scalar_lea.sflag [#allocation12], %s1493_s17 }
 0x266   : > { %2550 = dma.done.wait (%p2140_p12), %s1494_s15, 8192  }
 0x267   : > { %2552 = vsyncadd (%p2140_p12), %s1494_s15, 4294959104  ;;  %s31_s14 = sadd.s32 1, %s2575_s14   ;;  %s3343_s3 = sld [smem:[#allocation20_spill]] }
 0x268   : > { %p28_p5 = scmp.ge.s32.totalorder %s31_s14, 4   ;;  %s3344_s30 = smov %s2559_s10 }
 0x269   : > { %s3345_s10 = smov %s2563_s11  ;;  %s3346_s11 = smov %s2750_s29 }
 0x26a   : > { %s3347_s12 = smov %s2571_s13  ;;  %30 = sbr.rel (!%p28_p5) target bundleno = 14 (0xe), region = 137 }
 0x26d   : > { %s3348_s13 = smov %s3343_s3 }
 0x26f   :  { %1508 = vsyncpa [#allocation3], 1 }
 0x270   :  { %1510 = vsyncpa [#allocation3 + $0x1], 1 }
 0x271   :  { %1511 = vsyncpa [#allocation6], 1 }
 0x272   :  { %1512 = vsyncpa [#allocation9], 1 }
 0x273   :  { %1513 = vsyncpa [#allocation4], 1 }
 0x274   :  { %1515 = vsyncpa [#allocation4 + $0x1], 1 }
 0x275   :  { %1516 = vsyncpa [#allocation12], 1 }
 0x276   :  { %1518 = vsyncpa [#allocation12 + $0x1], 1 }

</bundles_post_ra>
